<compile_context>
chip_gen: v7x
topology: tpu7x:2x2x1
jax: 0.10.0
libtpu: 0.0.40
codegen_flags: <defaults>
</compile_context>

<pallas_src>
import functools
import math

import jax
import jax.numpy as jnp
from jax.experimental import pallas as pl
from jax.experimental.pallas import tpu as pltpu


# ----------------------------- Pallas kernel -----------------------------

def _layer_norm(x, gamma, beta, eps=1e-5):
    mean = jnp.mean(x, axis=-1, keepdims=True)
    var = jnp.mean((x - mean) ** 2, axis=-1, keepdims=True)
    return (x - mean) * jax.lax.rsqrt(var + eps) * gamma + beta


def encoder_stack_kernel(x_ref, mask_ref,
                         wqkv_ref, bqkv_ref, wo_ref, bo_ref,
                         ln1_g_ref, ln1_b_ref,
                         w1_ref, b1_ref, w2_ref, b2_ref,
                         ln2_g_ref, ln2_b_ref,
                         o_ref, *, num_heads):
    """One encoder layer (MHSA + LN + FFN + LN) for one batch row; the layer index is
    the second grid axis and the activations live in the (VMEM-resident) output block."""
    n = pl.program_id(1)

    # Layer 0: seed the resident activation block with the embedded input.
    @pl.when(n == 0)
    def _():
        o_ref[...] = x_ref[...]

    x = o_ref[0]                                   # (S, D) f32, resident across layers
    S, D = x.shape
    H = num_heads
    dh = D // H
    scale = 1.0 / math.sqrt(dh)

    # ---- fused QKV projection: bf16 operands on the MXU, f32 accumulation ----
    x_bf = x.astype(jnp.bfloat16)
    qkv = jnp.dot(x_bf, wqkv_ref[0], preferred_element_type=jnp.float32)
    qkv = qkv + bqkv_ref[0]                        # (S, 3D) f32
    q = qkv[:, 0:D]
    k = qkv[:, D:2 * D]
    v = qkv[:, 2 * D:3 * D]

    # ---- batched multi-head attention (no per-head Python loop / concat) ----
    qh = jnp.transpose(q.reshape(S, H, dh), (1, 0, 2))   # (H, S, dh) f32
    kh = jnp.transpose(k.reshape(S, H, dh), (1, 0, 2))
    vh = jnp.transpose(v.reshape(S, H, dh), (1, 0, 2))

    mask = mask_ref[0]                             # (1, S): 1.0 = keep, 0.0 = pad
    neg = (1.0 - mask) * (-1e9)                    # additive mask over key positions

    s = jnp.einsum('hqd,hkd->hqk',
                   qh.astype(jnp.bfloat16), kh.astype(jnp.bfloat16),
                   preferred_element_type=jnp.float32)
    s = s * scale + neg                            # (H, S, S); mask broadcasts over keys
    s = s - jnp.max(s, axis=-1, keepdims=True)
    p = jnp.exp(s)
    # softmax normalization via EUP reciprocal (frees the VALU divide).
    p = p * pl.reciprocal(jnp.sum(p, axis=-1, keepdims=True), approx=True)

    ctx = jnp.einsum('hqk,hkd->hqd',
                     p.astype(jnp.bfloat16), vh.astype(jnp.bfloat16),
                     preferred_element_type=jnp.float32)   # (H, S, dh) f32
    attn = jnp.transpose(ctx, (1, 0, 2)).reshape(S, D)      # (S, D)

    out = jnp.dot(attn.astype(jnp.bfloat16), wo_ref[0],
                  preferred_element_type=jnp.float32) + bo_ref[0]
    y = _layer_norm(x + out, ln1_g_ref[0], ln1_b_ref[0])    # residual + LN (f32)

    # ---- position-wise FFN (Linear -> ReLU -> Linear) + residual + LN ----
    h = jnp.dot(y.astype(jnp.bfloat16), w1_ref[0],
                preferred_element_type=jnp.float32) + b1_ref[0]
    h = jnp.maximum(h, 0.0)
    out2 = jnp.dot(h.astype(jnp.bfloat16), w2_ref[0],
                   preferred_element_type=jnp.float32) + b2_ref[0]
    o_ref[0] = _layer_norm(y + out2, ln2_g_ref[0], ln2_b_ref[0])


# ----------------------------- Pallas wrapper -----------------------------

def encoder_stack(x, mask3, p, num_heads):
    """Runs all N encoder layers in a single pallas_call: grid = (batch, layer)."""
    B, S, D = x.shape
    N = p["wqkv"].shape[0]
    dff = p["w1"].shape[2]
    kernel = functools.partial(encoder_stack_kernel, num_heads=num_heads)

    def act_spec():
        # Constant across the layer axis -> VMEM-resident activations.
        return pl.BlockSpec((1, S, D), lambda b, n: (b, 0, 0))

    def w_spec(shape):
        # One layer's slice of the stacked weights; indexed by the layer coordinate.
        return pl.BlockSpec((1,) + shape, lambda b, n: (n, 0, 0))

    return pl.pallas_call(
        kernel,
        out_shape=jax.ShapeDtypeStruct((B, S, D), jnp.float32),
        grid=(B, N),
        in_specs=[
            act_spec(),                                        # embedded activations
            pl.BlockSpec((1, 1, S), lambda b, n: (b, 0, 0)),   # key-padding mask
            w_spec((D, 3 * D)), w_spec((1, 3 * D)),            # fused Wqkv / bqkv
            w_spec((D, D)), w_spec((1, D)),                    # Wo / bo
            w_spec((1, D)), w_spec((1, D)),                    # LN1 gamma / beta
            w_spec((D, dff)), w_spec((1, dff)),                # W1 / b1
            w_spec((dff, D)), w_spec((1, D)),                  # W2 / b2
            w_spec((1, D)), w_spec((1, D)),                    # LN2 gamma / beta
        ],
        out_specs=act_spec(),
        input_output_aliases={0: 0},   # reuse the activation HBM buffer as output
        compiler_params=pltpu.CompilerParams(
            dimension_semantics=("parallel", "arbitrary")),
    )(x, mask3,
      p["wqkv"], p["bqkv"], p["wo"], p["bo"], p["ln1_g"], p["ln1_b"],
      p["w1"], p["b1"], p["w2"], p["b2"], p["ln2_g"], p["ln2_b"])


# ----------------------------- Glue (plain JAX) -----------------------------

def sinusoidal_pe(max_length, d_model):
    pos = jnp.arange(max_length, dtype=jnp.float32)[:, None]
    i = jnp.arange(0, d_model, 2, dtype=jnp.float32)
    angle = pos / jnp.power(10000.0, i / d_model)
    pe = jnp.zeros((max_length, d_model), dtype=jnp.float32)
    pe = pe.at[:, 0::2].set(jnp.sin(angle))
    pe = pe.at[:, 1::2].set(jnp.cos(angle))
    return pe


def positional_embedding(tokens, emb_table, pe_table, d_model):
    # token embedding (padding row already zeroed) scaled by sqrt(d_model) + PE
    x = emb_table[tokens] * math.sqrt(d_model)             # (B, S, D) f32
    return x + pe_table[: tokens.shape[1]][None, :, :]


@functools.partial(jax.jit, static_argnames=("num_heads",))
def encoder_stacks_forward(tokens, mask, params, *, num_heads):
    d_model = params["emb"].shape[1]
    x = positional_embedding(tokens, params["emb"], params["pe"], d_model)
    # dropout p=0.0 -> identity (not emitted)
    B, S = tokens.shape
    if mask is None:
        mask3 = jnp.ones((B, 1, S), jnp.float32)
    else:
        mask3 = mask.reshape(B, 1, S).astype(jnp.float32)
    return encoder_stack(x, mask3, params["layers"], num_heads)


# ----------------------------- Parameter init -----------------------------

def init_params(key, *, vocab_size, d_model, num_heads, N, dff, max_length,
                padding_idx=0):
    del num_heads, max_length  # shapes do not depend on them here
    keys = jax.random.split(key, 5)
    emb = 0.02 * jax.random.normal(keys[0], (vocab_size, d_model), jnp.float32)
    emb = emb.at[padding_idx].set(0.0)

    def dense_bf16(k, *shape):
        # Matmul weights stored in bf16 (MXU-native, half the DMA bytes).
        return (0.02 * jax.random.normal(k, shape, jnp.float32)).astype(jnp.bfloat16)

    # Per-layer weights are stacked along a leading N axis (indexed by the layer grid axis).
    layers = {
        # Fused QKV: for a torch checkpoint, concatenate Wq^T, Wk^T, Wv^T along axis=-1.
        "wqkv": dense_bf16(keys[1], N, d_model, 3 * d_model),
        "bqkv": jnp.zeros((N, 1, 3 * d_model), jnp.float32),
        "wo": dense_bf16(keys[2], N, d_model, d_model),
        "bo": jnp.zeros((N, 1, d_model), jnp.float32),
        "ln1_g": jnp.ones((N, 1, d_model), jnp.float32),
        "ln1_b": jnp.zeros((N, 1, d_model), jnp.float32),
        "w1": dense_bf16(keys[3], N, d_model, dff),
        "b1": jnp.zeros((N, 1, dff), jnp.float32),
        "w2": dense_bf16(keys[4], N, dff, d_model),
        "b2": jnp.zeros((N, 1, d_model), jnp.float32),
        "ln2_g": jnp.ones((N, 1, d_model), jnp.float32),
        "ln2_b": jnp.zeros((N, 1, d_model), jnp.float32),
    }

    return {"emb": emb, "pe": sinusoidal_pe(4000 if False else 64, d_model), "layers": layers}


# ----------------------------- Demo -----------------------------

if __name__ == "__main__":
    # d_model a multiple of 128 so activations/outputs are lane-dense and
    # head_dim == 128 (dense MXU tiles). Shapes kept small.
    d_model, num_heads, N, dff = 256, 2, 2, 512
    vocab_size, max_length, padding_idx = 50, 64, 0
    B, S = 2, 16

    key = jax.random.PRNGKey(0)
    pkey, tkey = jax.random.split(key)

    params = init_params(pkey, vocab_size=vocab_size, d_model=d_model,
                         num_heads=num_heads, N=N, dff=dff,
                         max_length=max_length, padding_idx=padding_idx)

    tokens = jax.random.randint(tkey, (B, S), 1, vocab_size, dtype=jnp.int32)
    tokens = tokens.at[:, -3:].set(padding_idx)             # simulate padding tail
    mask = (tokens != padding_idx).astype(jnp.float32)      # [B, S], 1 = valid
    # Note: an all-padding row would softmax to a uniform distribution over padded
    # keys (matches additive-mask behavior), not zeros.

    out = encoder_stacks_forward(tokens, mask, params, num_heads=num_heads)
    out = jax.block_until_ready(out)

    assert out.shape == (B, S, d_model)
    assert bool(jnp.all(jnp.isfinite(out)))
    print("KERNEL_OK")
</pallas_src>

<mosaic_0001>
module attributes {stable_mosaic.version = 11 : i64} {
  func.func @encoder_stack_kernel(%arg0: i32, %arg1: i32, %arg2: memref<1x16x256xf32, #tpu.memory_space<vmem>>, %arg3: memref<1x1x16xf32, #tpu.memory_space<vmem>>, %arg4: memref<1x256x768xbf16, #tpu.memory_space<vmem>>, %arg5: memref<1x1x768xf32, #tpu.memory_space<vmem>>, %arg6: memref<1x256x256xbf16, #tpu.memory_space<vmem>>, %arg7: memref<1x1x256xf32, #tpu.memory_space<vmem>>, %arg8: memref<1x1x256xf32, #tpu.memory_space<vmem>>, %arg9: memref<1x1x256xf32, #tpu.memory_space<vmem>>, %arg10: memref<1x256x512xbf16, #tpu.memory_space<vmem>>, %arg11: memref<1x1x512xf32, #tpu.memory_space<vmem>>, %arg12: memref<1x512x256xbf16, #tpu.memory_space<vmem>>, %arg13: memref<1x1x256xf32, #tpu.memory_space<vmem>>, %arg14: memref<1x1x256xf32, #tpu.memory_space<vmem>>, %arg15: memref<1x1x256xf32, #tpu.memory_space<vmem>>, %arg16: memref<1x16x256xf32, #tpu.memory_space<vmem>>) attributes {dimension_semantics = [#tpu.dimension_semantics<parallel>, #tpu.dimension_semantics<arbitrary>], iteration_bounds = array<i64: 2, 2>, scalar_prefetch = 0 : i64, scratch_operands = 0 : i64, tpu.core_type = #tpu.core_type<tc>, window_params = [{transform_indices = @transform_0, window_bounds = array<i64: 1, 16, 256>}, {transform_indices = @transform_1, window_bounds = array<i64: 1, 1, 16>}, {transform_indices = @transform_2, window_bounds = array<i64: 1, 256, 768>}, {transform_indices = @transform_3, window_bounds = array<i64: 1, 1, 768>}, {transform_indices = @transform_4, window_bounds = array<i64: 1, 256, 256>}, {transform_indices = @transform_5, window_bounds = array<i64: 1, 1, 256>}, {transform_indices = @transform_6, window_bounds = array<i64: 1, 1, 256>}, {transform_indices = @transform_7, window_bounds = array<i64: 1, 1, 256>}, {transform_indices = @transform_8, window_bounds = array<i64: 1, 256, 512>}, {transform_indices = @transform_9, window_bounds = array<i64: 1, 1, 512>}, {transform_indices = @transform_10, window_bounds = array<i64: 1, 512, 256>}, {transform_indices = @transform_11, window_bounds = array<i64: 1, 1, 256>}, {transform_indices = @transform_12, window_bounds = array<i64: 1, 1, 256>}, {transform_indices = @transform_13, window_bounds = array<i64: 1, 1, 256>}, {transform_indices = @transform_14, window_bounds = array<i64: 1, 16, 256>}]} {
    %c0_i32 = arith.constant 0 : i32
    %0 = arith.cmpi eq, %arg1, %c0_i32 : i32
    %1 = arith.extui %0 : i1 to i32
    %c0_i32_0 = arith.constant 0 : i32
    %2 = arith.cmpi ne, %1, %c0_i32_0 : i32
    scf.if %2 {
      %c0_66 = arith.constant 0 : index
      %c0_67 = arith.constant 0 : index
      %c0_68 = arith.constant 0 : index
      %134 = vector.load %arg2[%c0_66, %c0_67, %c0_68] : memref<1x16x256xf32, #tpu.memory_space<vmem>>, vector<1x16x256xf32>
      %c0_69 = arith.constant 0 : index
      %c0_70 = arith.constant 0 : index
      %c0_71 = arith.constant 0 : index
      %135 = vector.load %arg16[%c0_69, %c0_70, %c0_71] : memref<1x16x256xf32, #tpu.memory_space<vmem>>, vector<1x16x256xf32>
      tpu.vector_store %arg16[%c0_69, %c0_70, %c0_71], %134 {strides = array<i32>} : memref<1x16x256xf32, #tpu.memory_space<vmem>>, vector<1x16x256xf32>,
    } else {
    }
    %c0 = arith.constant 0 : index
    %c0_1 = arith.constant 0 : index
    %c0_2 = arith.constant 0 : index
    %3 = vector.load %arg16[%c0, %c0_1, %c0_2] : memref<1x16x256xf32, #tpu.memory_space<vmem>>, vector<1x16x256xf32>
    %4 = vector.shape_cast %3 : vector<1x16x256xf32> to vector<16x256xf32>
    %5 = arith.truncf %4 : vector<16x256xf32> to vector<16x256xbf16>
    %c0_3 = arith.constant 0 : index
    %c0_4 = arith.constant 0 : index
    %c0_5 = arith.constant 0 : index
    %6 = vector.load %arg4[%c0_3, %c0_4, %c0_5] : memref<1x256x768xbf16, #tpu.memory_space<vmem>>, vector<1x256x768xbf16>
    %7 = vector.shape_cast %6 : vector<1x256x768xbf16> to vector<256x768xbf16>
    %cst = arith.constant dense<0.000000e+00> : vector<16x768xf32>
    %8 = tpu.matmul %5, %7, %cst {dimension_numbers = #tpu.dot_dimension_numbers<[1], [0], [0], [1], [0, 0, 1, 1], [], []>} : vector<16x256xbf16>, vector<256x768xbf16>, vector<16x768xf32> -> vector<16x768xf32>
    %c0_6 = arith.constant 0 : index
    %c0_7 = arith.constant 0 : index
    %c0_8 = arith.constant 0 : index
    %9 = vector.load %arg5[%c0_6, %c0_7, %c0_8] : memref<1x1x768xf32, #tpu.memory_space<vmem>>, vector<1x1x768xf32>
    %10 = vector.shape_cast %9 : vector<1x1x768xf32> to vector<1x768xf32>
    %11 = vector.broadcast %10 : vector<1x768xf32> to vector<16x768xf32>
    %12 = arith.addf %8, %11 : vector<16x768xf32>
    %13 = vector.extract_strided_slice %12 {offsets = [0, 0], sizes = [16, 256], strides = [1, 1]} : vector<16x768xf32> to vector<16x256xf32>
    %14 = vector.extract_strided_slice %12 {offsets = [0, 256], sizes = [16, 256], strides = [1, 1]} : vector<16x768xf32> to vector<16x256xf32>
    %15 = vector.extract_strided_slice %12 {offsets = [0, 512], sizes = [16, 256], strides = [1, 1]} : vector<16x768xf32> to vector<16x256xf32>
    %16 = vector.shape_cast %13 : vector<16x256xf32> to vector<16x2x128xf32>
    %17 = tpu.transpose %16, [1, 0, 2] : vector<16x2x128xf32> -> vector<2x16x128xf32>
    %18 = vector.shape_cast %14 : vector<16x256xf32> to vector<16x2x128xf32>
    %19 = tpu.transpose %18, [1, 0, 2] : vector<16x2x128xf32> -> vector<2x16x128xf32>
    %20 = vector.shape_cast %15 : vector<16x256xf32> to vector<16x2x128xf32>
    %21 = tpu.transpose %20, [1, 0, 2] : vector<16x2x128xf32> -> vector<2x16x128xf32>
    %c0_9 = arith.constant 0 : index
    %c0_10 = arith.constant 0 : index
    %c0_11 = arith.constant 0 : index
    %22 = vector.load %arg3[%c0_9, %c0_10, %c0_11] : memref<1x1x16xf32, #tpu.memory_space<vmem>>, vector<1x1x16xf32>
    %23 = vector.shape_cast %22 : vector<1x1x16xf32> to vector<1x16xf32>
    %cst_12 = arith.constant 1.000000e+00 : f32
    %24 = vector.broadcast %cst_12 : f32 to vector<1x16xf32>
    %25 = arith.subf %24, %23 : vector<1x16xf32>
    %cst_13 = arith.constant -1.000000e+09 : f32
    %26 = vector.broadcast %cst_13 : f32 to vector<1x16xf32>
    %27 = arith.mulf %25, %26 : vector<1x16xf32>
    %28 = arith.truncf %17 : vector<2x16x128xf32> to vector<2x16x128xbf16>
    %29 = arith.truncf %19 : vector<2x16x128xf32> to vector<2x16x128xbf16>
    "tpu.trace_start"() <{level = 10 : i32, message = "hqd,hkd->hqk"}> : () -> ()
    %cst_14 = arith.constant dense<0.000000e+00> : vector<2x16x16xf32>
    %30 = tpu.matmul %28, %29, %cst_14 {dimension_numbers = #tpu.dot_dimension_numbers<[2], [2], [1], [1], [0, 0, 0, 1, 1, 1], [0], [0]>} : vector<2x16x128xbf16>, vector<2x16x128xbf16>, vector<2x16x16xf32> -> vector<2x16x16xf32>
    "tpu.trace_stop"() : () -> ()
    %cst_15 = arith.constant 0.0883883461 : f32
    %31 = vector.broadcast %cst_15 : f32 to vector<2x16x16xf32>
    %32 = arith.mulf %30, %31 : vector<2x16x16xf32>
    %33 = vector.shape_cast %27 : vector<1x16xf32> to vector<1x1x16xf32>
    %34 = vector.broadcast %33 : vector<1x1x16xf32> to vector<2x16x16xf32>
    %35 = arith.addf %32, %34 : vector<2x16x16xf32>
    %cst_16 = arith.constant dense<0xFF800000> : vector<2x16xf32>
    %36 = vector.multi_reduction <maximumf>, %35, %cst_16 [2] : vector<2x16x16xf32> to vector<2x16xf32>
    %37 = vector.shape_cast %36 : vector<2x16xf32> to vector<2x16x1xf32>
    %38 = vector.broadcast %37 : vector<2x16x1xf32> to vector<2x16x16xf32>
    %39 = arith.subf %35, %38 : vector<2x16x16xf32>
    %40 = math.exp %39 : vector<2x16x16xf32>
    %cst_17 = arith.constant dense<0.000000e+00> : vector<2x16xf32>
    %41 = vector.multi_reduction <add>, %40, %cst_17 [2] : vector<2x16x16xf32> to vector<2x16xf32>
    %42 = vector.shape_cast %41 : vector<2x16xf32> to vector<2x16x1xf32>
    %43 = tpu.reciprocal %42 {approx = true} : vector<2x16x1xf32> -> vector<2x16x1xf32>
    %44 = vector.broadcast %43 : vector<2x16x1xf32> to vector<2x16x16xf32>
    %45 = arith.mulf %40, %44 : vector<2x16x16xf32>
    %46 = arith.truncf %45 : vector<2x16x16xf32> to vector<2x16x16xbf16>
    %47 = arith.truncf %21 : vector<2x16x128xf32> to vector<2x16x128xbf16>
    "tpu.trace_start"() <{level = 10 : i32, message = "hqk,hkd->hqd"}> : () -> ()
    %cst_18 = arith.constant dense<0.000000e+00> : vector<2x16x128xf32>
    %48 = tpu.matmul %46, %47, %cst_18 {dimension_numbers = #tpu.dot_dimension_numbers<[2], [1], [1], [2], [0, 0, 0, 1, 1, 2], [0], [0]>} : vector<2x16x16xbf16>, vector<2x16x128xbf16>, vector<2x16x128xf32> -> vector<2x16x128xf32>
    "tpu.trace_stop"() : () -> ()
    %49 = tpu.transpose %48, [1, 0, 2] : vector<2x16x128xf32> -> vector<16x2x128xf32>
    %50 = vector.shape_cast %49 : vector<16x2x128xf32> to vector<16x256xf32>
    %51 = arith.truncf %50 : vector<16x256xf32> to vector<16x256xbf16>
    %c0_19 = arith.constant 0 : index
    %c0_20 = arith.constant 0 : index
    %c0_21 = arith.constant 0 : index
    %52 = vector.load %arg6[%c0_19, %c0_20, %c0_21] : memref<1x256x256xbf16, #tpu.memory_space<vmem>>, vector<1x256x256xbf16>
    %53 = vector.shape_cast %52 : vector<1x256x256xbf16> to vector<256x256xbf16>
    %cst_22 = arith.constant dense<0.000000e+00> : vector<16x256xf32>
    %54 = tpu.matmul %51, %53, %cst_22 {dimension_numbers = #tpu.dot_dimension_numbers<[1], [0], [0], [1], [0, 0, 1, 1], [], []>} : vector<16x256xbf16>, vector<256x256xbf16>, vector<16x256xf32> -> vector<16x256xf32>
    %c0_23 = arith.constant 0 : index
    %c0_24 = arith.constant 0 : index
    %c0_25 = arith.constant 0 : index
    %55 = vector.load %arg7[%c0_23, %c0_24, %c0_25] : memref<1x1x256xf32, #tpu.memory_space<vmem>>, vector<1x1x256xf32>
    %56 = vector.shape_cast %55 : vector<1x1x256xf32> to vector<1x256xf32>
    %57 = vector.broadcast %56 : vector<1x256xf32> to vector<16x256xf32>
    %58 = arith.addf %54, %57 : vector<16x256xf32>
    %59 = arith.addf %4, %58 : vector<16x256xf32>
    %c0_26 = arith.constant 0 : index
    %c0_27 = arith.constant 0 : index
    %c0_28 = arith.constant 0 : index
    %60 = vector.load %arg8[%c0_26, %c0_27, %c0_28] : memref<1x1x256xf32, #tpu.memory_space<vmem>>, vector<1x1x256xf32>
    %61 = vector.shape_cast %60 : vector<1x1x256xf32> to vector<1x256xf32>
    %c0_29 = arith.constant 0 : index
    %c0_30 = arith.constant 0 : index
    %c0_31 = arith.constant 0 : index
    %62 = vector.load %arg9[%c0_29, %c0_30, %c0_31] : memref<1x1x256xf32, #tpu.memory_space<vmem>>, vector<1x1x256xf32>
    %63 = vector.shape_cast %62 : vector<1x1x256xf32> to vector<1x256xf32>
    %cst_32 = arith.constant dense<0.000000e+00> : vector<16xf32>
    %64 = vector.multi_reduction <add>, %59, %cst_32 [1] : vector<16x256xf32> to vector<16xf32>
    %65 = vector.shape_cast %64 : vector<16xf32> to vector<16x1xf32>
    %cst_33 = arith.constant 2.560000e+02 : f32
    %66 = vector.broadcast %cst_33 : f32 to vector<16x1xf32>
    %67 = arith.divf %65, %66 : vector<16x1xf32>
    %68 = vector.broadcast %67 : vector<16x1xf32> to vector<16x256xf32>
    %69 = arith.subf %59, %68 : vector<16x256xf32>
    %70 = arith.mulf %69, %69 : vector<16x256xf32>
    %cst_34 = arith.constant dense<0.000000e+00> : vector<16xf32>
    %71 = vector.multi_reduction <add>, %70, %cst_34 [1] : vector<16x256xf32> to vector<16xf32>
    %72 = vector.shape_cast %71 : vector<16xf32> to vector<16x1xf32>
    %cst_35 = arith.constant 2.560000e+02 : f32
    %73 = vector.broadcast %cst_35 : f32 to vector<16x1xf32>
    %74 = arith.divf %72, %73 : vector<16x1xf32>
    %75 = vector.broadcast %67 : vector<16x1xf32> to vector<16x256xf32>
    %76 = arith.subf %59, %75 : vector<16x256xf32>
    %cst_36 = arith.constant 9.99999974E-6 : f32
    %77 = vector.broadcast %cst_36 : f32 to vector<16x1xf32>
    %78 = arith.addf %74, %77 : vector<16x1xf32>
    %79 = math.rsqrt %78 : vector<16x1xf32>
    %80 = vector.broadcast %79 : vector<16x1xf32> to vector<16x256xf32>
    %81 = arith.mulf %76, %80 : vector<16x256xf32>
    %82 = vector.broadcast %61 : vector<1x256xf32> to vector<16x256xf32>
    %83 = arith.mulf %81, %82 : vector<16x256xf32>
    %84 = vector.broadcast %63 : vector<1x256xf32> to vector<16x256xf32>
    %85 = arith.addf %83, %84 : vector<16x256xf32>
    %86 = arith.truncf %85 : vector<16x256xf32> to vector<16x256xbf16>
    %c0_37 = arith.constant 0 : index
    %c0_38 = arith.constant 0 : index
    %c0_39 = arith.constant 0 : index
    %87 = vector.load %arg10[%c0_37, %c0_38, %c0_39] : memref<1x256x512xbf16, #tpu.memory_space<vmem>>, vector<1x256x512xbf16>
    %88 = vector.shape_cast %87 : vector<1x256x512xbf16> to vector<256x512xbf16>
    %cst_40 = arith.constant dense<0.000000e+00> : vector<16x512xf32>
    %89 = tpu.matmul %86, %88, %cst_40 {dimension_numbers = #tpu.dot_dimension_numbers<[1], [0], [0], [1], [0, 0, 1, 1], [], []>} : vector<16x256xbf16>, vector<256x512xbf16>, vector<16x512xf32> -> vector<16x512xf32>
    %c0_41 = arith.constant 0 : index
    %c0_42 = arith.constant 0 : index
    %c0_43 = arith.constant 0 : index
    %90 = vector.load %arg11[%c0_41, %c0_42, %c0_43] : memref<1x1x512xf32, #tpu.memory_space<vmem>>, vector<1x1x512xf32>
    %91 = vector.shape_cast %90 : vector<1x1x512xf32> to vector<1x512xf32>
    %92 = vector.broadcast %91 : vector<1x512xf32> to vector<16x512xf32>
    %93 = arith.addf %89, %92 : vector<16x512xf32>
    %cst_44 = arith.constant 0.000000e+00 : f32
    %94 = vector.broadcast %cst_44 : f32 to vector<16x512xf32>
    %95 = arith.maximumf %93, %94 : vector<16x512xf32>
    %96 = arith.truncf %95 : vector<16x512xf32> to vector<16x512xbf16>
    %c0_45 = arith.constant 0 : index
    %c0_46 = arith.constant 0 : index
    %c0_47 = arith.constant 0 : index
    %97 = vector.load %arg12[%c0_45, %c0_46, %c0_47] : memref<1x512x256xbf16, #tpu.memory_space<vmem>>, vector<1x512x256xbf16>
    %98 = vector.shape_cast %97 : vector<1x512x256xbf16> to vector<512x256xbf16>
    %cst_48 = arith.constant dense<0.000000e+00> : vector<16x256xf32>
    %99 = tpu.matmul %96, %98, %cst_48 {dimension_numbers = #tpu.dot_dimension_numbers<[1], [0], [0], [1], [0, 0, 1, 1], [], []>} : vector<16x512xbf16>, vector<512x256xbf16>, vector<16x256xf32> -> vector<16x256xf32>
    %c0_49 = arith.constant 0 : index
    %c0_50 = arith.constant 0 : index
    %c0_51 = arith.constant 0 : index
    %100 = vector.load %arg13[%c0_49, %c0_50, %c0_51] : memref<1x1x256xf32, #tpu.memory_space<vmem>>, vector<1x1x256xf32>
    %101 = vector.shape_cast %100 : vector<1x1x256xf32> to vector<1x256xf32>
    %102 = vector.broadcast %101 : vector<1x256xf32> to vector<16x256xf32>
    %103 = arith.addf %99, %102 : vector<16x256xf32>
    %104 = arith.addf %85, %103 : vector<16x256xf32>
    %c0_52 = arith.constant 0 : index
    %c0_53 = arith.constant 0 : index
    %c0_54 = arith.constant 0 : index
    %105 = vector.load %arg14[%c0_52, %c0_53, %c0_54] : memref<1x1x256xf32, #tpu.memory_space<vmem>>, vector<1x1x256xf32>
    %106 = vector.shape_cast %105 : vector<1x1x256xf32> to vector<1x256xf32>
    %c0_55 = arith.constant 0 : index
    %c0_56 = arith.constant 0 : index
    %c0_57 = arith.constant 0 : index
    %107 = vector.load %arg15[%c0_55, %c0_56, %c0_57] : memref<1x1x256xf32, #tpu.memory_space<vmem>>, vector<1x1x256xf32>
    %108 = vector.shape_cast %107 : vector<1x1x256xf32> to vector<1x256xf32>
    %cst_58 = arith.constant dense<0.000000e+00> : vector<16xf32>
    %109 = vector.multi_reduction <add>, %104, %cst_58 [1] : vector<16x256xf32> to vector<16xf32>
    %110 = vector.shape_cast %109 : vector<16xf32> to vector<16x1xf32>
    %cst_59 = arith.constant 2.560000e+02 : f32
    %111 = vector.broadcast %cst_59 : f32 to vector<16x1xf32>
    %112 = arith.divf %110, %111 : vector<16x1xf32>
    %113 = vector.broadcast %112 : vector<16x1xf32> to vector<16x256xf32>
    %114 = arith.subf %104, %113 : vector<16x256xf32>
    %115 = arith.mulf %114, %114 : vector<16x256xf32>
    %cst_60 = arith.constant dense<0.000000e+00> : vector<16xf32>
    %116 = vector.multi_reduction <add>, %115, %cst_60 [1] : vector<16x256xf32> to vector<16xf32>
    %117 = vector.shape_cast %116 : vector<16xf32> to vector<16x1xf32>
    %cst_61 = arith.constant 2.560000e+02 : f32
    %118 = vector.broadcast %cst_61 : f32 to vector<16x1xf32>
    %119 = arith.divf %117, %118 : vector<16x1xf32>
    %120 = vector.broadcast %112 : vector<16x1xf32> to vector<16x256xf32>
    %121 = arith.subf %104, %120 : vector<16x256xf32>
    %cst_62 = arith.constant 9.99999974E-6 : f32
    %122 = vector.broadcast %cst_62 : f32 to vector<16x1xf32>
    %123 = arith.addf %119, %122 : vector<16x1xf32>
    %124 = math.rsqrt %123 : vector<16x1xf32>
    %125 = vector.broadcast %124 : vector<16x1xf32> to vector<16x256xf32>
    %126 = arith.mulf %121, %125 : vector<16x256xf32>
    %127 = vector.broadcast %106 : vector<1x256xf32> to vector<16x256xf32>
    %128 = arith.mulf %126, %127 : vector<16x256xf32>
    %129 = vector.broadcast %108 : vector<1x256xf32> to vector<16x256xf32>
    %130 = arith.addf %128, %129 : vector<16x256xf32>
    %c0_63 = arith.constant 0 : index
    %c0_64 = arith.constant 0 : index
    %c0_65 = arith.constant 0 : index
    %131 = vector.load %arg16[%c0_63, %c0_64, %c0_65] : memref<1x16x256xf32, #tpu.memory_space<vmem>>, vector<1x16x256xf32>
    %132 = vector.shape_cast %131 : vector<1x16x256xf32> to vector<16x256xf32>
    %133 = vector.shape_cast %130 : vector<16x256xf32> to vector<1x16x256xf32>
    tpu.vector_store %arg16[%c0_63, %c0_64, %c0_65], %133 {strides = array<i32>} : memref<1x16x256xf32, #tpu.memory_space<vmem>>, vector<1x16x256xf32>,
    return
  }
  func.func @transform_0(%arg0: i32, %arg1: i32) -> (i32, i32, i32) {
    %c0_i32 = arith.constant 0 : i32
    %c0_i32_0 = arith.constant 0 : i32
    %c0_i32_1 = arith.constant 0 : i32
    return %arg0, %c0_i32, %c0_i32_0 : i32, i32, i32
  }
  func.func @transform_1(%arg0: i32, %arg1: i32) -> (i32, i32, i32) {
    %c0_i32 = arith.constant 0 : i32
    %c0_i32_0 = arith.constant 0 : i32
    %c0_i32_1 = arith.constant 0 : i32
    return %arg0, %c0_i32, %c0_i32_0 : i32, i32, i32
  }
  func.func @transform_2(%arg0: i32, %arg1: i32) -> (i32, i32, i32) {
    %c0_i32 = arith.constant 0 : i32
    %c0_i32_0 = arith.constant 0 : i32
    %c0_i32_1 = arith.constant 0 : i32
    return %arg1, %c0_i32, %c0_i32_0 : i32, i32, i32
  }
  func.func @transform_3(%arg0: i32, %arg1: i32) -> (i32, i32, i32) {
    %c0_i32 = arith.constant 0 : i32
    %c0_i32_0 = arith.constant 0 : i32
    %c0_i32_1 = arith.constant 0 : i32
    return %arg1, %c0_i32, %c0_i32_0 : i32, i32, i32
  }
  func.func @transform_4(%arg0: i32, %arg1: i32) -> (i32, i32, i32) {
    %c0_i32 = arith.constant 0 : i32
    %c0_i32_0 = arith.constant 0 : i32
    %c0_i32_1 = arith.constant 0 : i32
    return %arg1, %c0_i32, %c0_i32_0 : i32, i32, i32
  }
  func.func @transform_5(%arg0: i32, %arg1: i32) -> (i32, i32, i32) {
    %c0_i32 = arith.constant 0 : i32
    %c0_i32_0 = arith.constant 0 : i32
    %c0_i32_1 = arith.constant 0 : i32
    return %arg1, %c0_i32, %c0_i32_0 : i32, i32, i32
  }
  func.func @transform_6(%arg0: i32, %arg1: i32) -> (i32, i32, i32) {
    %c0_i32 = arith.constant 0 : i32
    %c0_i32_0 = arith.constant 0 : i32
    %c0_i32_1 = arith.constant 0 : i32
    return %arg1, %c0_i32, %c0_i32_0 : i32, i32, i32
  }
  func.func @transform_7(%arg0: i32, %arg1: i32) -> (i32, i32, i32) {
    %c0_i32 = arith.constant 0 : i32
    %c0_i32_0 = arith.constant 0 : i32
    %c0_i32_1 = arith.constant 0 : i32
    return %arg1, %c0_i32, %c0_i32_0 : i32, i32, i32
  }
  func.func @transform_8(%arg0: i32, %arg1: i32) -> (i32, i32, i32) {
    %c0_i32 = arith.constant 0 : i32
    %c0_i32_0 = arith.constant 0 : i32
    %c0_i32_1 = arith.constant 0 : i32
    return %arg1, %c0_i32, %c0_i32_0 : i32, i32, i32
  }
  func.func @transform_9(%arg0: i32, %arg1: i32) -> (i32, i32, i32) {
    %c0_i32 = arith.constant 0 : i32
    %c0_i32_0 = arith.constant 0 : i32
    %c0_i32_1 = arith.constant 0 : i32
    return %arg1, %c0_i32, %c0_i32_0 : i32, i32, i32
  }
  func.func @transform_10(%arg0: i32, %arg1: i32) -> (i32, i32, i32) {
    %c0_i32 = arith.constant 0 : i32
    %c0_i32_0 = arith.constant 0 : i32
    %c0_i32_1 = arith.constant 0 : i32
    return %arg1, %c0_i32, %c0_i32_0 : i32, i32, i32
  }
  func.func @transform_11(%arg0: i32, %arg1: i32) -> (i32, i32, i32) {
    %c0_i32 = arith.constant 0 : i32
    %c0_i32_0 = arith.constant 0 : i32
    %c0_i32_1 = arith.constant 0 : i32
    return %arg1, %c0_i32, %c0_i32_0 : i32, i32, i32
  }
  func.func @transform_12(%arg0: i32, %arg1: i32) -> (i32, i32, i32) {
    %c0_i32 = arith.constant 0 : i32
    %c0_i32_0 = arith.constant 0 : i32
    %c0_i32_1 = arith.constant 0 : i32
    return %arg1, %c0_i32, %c0_i32_0 : i32, i32, i32
  }
  func.func @transform_13(%arg0: i32, %arg1: i32) -> (i32, i32, i32) {
    %c0_i32 = arith.constant 0 : i32
    %c0_i32_0 = arith.constant 0 : i32
    %c0_i32_1 = arith.constant 0 : i32
    return %arg1, %c0_i32, %c0_i32_0 : i32, i32, i32
  }
  func.func @transform_14(%arg0: i32, %arg1: i32) -> (i32, i32, i32) {
    %c0_i32 = arith.constant 0 : i32
    %c0_i32_0 = arith.constant 0 : i32
    %c0_i32_1 = arith.constant 0 : i32
    return %arg0, %c0_i32, %c0_i32_0 : i32, i32, i32
  }
}

</mosaic_0001>

<bundles_post_ra>
// kernel: encoder_stacks_forward.1
= control target key start
LH: loop header
LB: loop body
LE: loop exit
PB: predicated region body
PF: predicated region fallthrough
CT: control target
= control target key end

     0   :  { %s6657_s0 = inlined_call_operand.hbm [shape: f32[2,16,256], index: 0, kind: input, shape index: {}, may-alias: {0,14}]   ;;  %s6658_s1 = inlined_call_operand.vmem [shape: f32[2,1,16], index: 1, kind: input, shape index: {}]   ;;  %s6659_s2 = inlined_call_operand.hbm [shape: bf16[2,256,768], index: 2, kind: input, shape index: {}]   ;;  %s6660_s3 = inlined_call_operand.vmem [shape: f32[2,1,768], index: 3, kind: input, shape index: {}]   ;;  %s6661_s4 = inlined_call_operand.vmem [shape: bf16[2,256,256], index: 4, kind: input, shape index: {}]   ;;  %s6662_s5 = inlined_call_operand.vmem [shape: f32[2,1,256], index: 5, kind: input, shape index: {}]   ;;  %s6663_s6 = inlined_call_operand.vmem [shape: f32[2,1,256], index: 6, kind: input, shape index: {}]   ;;  %s6664_s7 = inlined_call_operand.vmem [shape: f32[2,1,256], index: 7, kind: input, shape index: {}]   ;;  %s6665_s8 = inlined_call_operand.hbm [shape: bf16[2,256,512], index: 8, kind: input, shape index: {}]   ;;  %s6666_s9 = inlined_call_operand.vmem [shape: f32[2,1,512], index: 9, kind: input, shape index: {}]   ;;  %s6667_s10 = inlined_call_operand.hbm [shape: bf16[2,512,256], index: 10, kind: input, shape index: {}]   ;;  %s6668_s11 = inlined_call_operand.vmem [shape: f32[2,1,256], index: 11, kind: input, shape index: {}]   ;;  %s6669_s12 = inlined_call_operand.vmem [shape: f32[2,1,256], index: 12, kind: input, shape index: {}]   ;;  %s6670_s13 = inlined_call_operand.vmem [shape: f32[2,1,256], index: 13, kind: input, shape index: {}]   ;;  %s6671_s14 = inlined_call_operand.hbm [shape: f32[2,16,256], index: 14, kind: output, shape index: {}, may-alias: {0,14}]  }
   0x1   :  { %6699 = sst [smem:[#allocation32_spill]] %s6657_s0 }
   0x2   :  { %6700 = sst [smem:[#allocation33_spill]] %s6658_s1 }
   0x3   :  { %6701 = sst [smem:[#allocation34_spill]] %s6659_s2 }
   0x4   :  { %6702 = sst [smem:[#allocation35_spill]] %s6660_s3 }
   0x5   :  { %6703 = sst [smem:[#allocation36_spill]] %s6661_s4 }
   0x6   :  { %6704 = sst [smem:[#allocation37_spill]] %s6662_s5 }
   0x7   :  { %6705 = sst [smem:[#allocation38_spill]] %s6663_s6 }
   0x8   :  { %6706 = sst [smem:[#allocation39_spill]] %s6664_s7 }
   0x9   :  { %6707 = sst [smem:[#allocation40_spill]] %s6665_s8 }
   0xa   :  { %6708 = sst [smem:[#allocation41_spill]] %s6666_s9 }
   0xb   :  { %6709 = sst [smem:[#allocation42_spill]] %s6667_s10 }
   0xc   :  { %6710 = sst [smem:[#allocation43_spill]] %s6668_s11 }
   0xd   :  { %6711 = sst [smem:[#allocation44_spill]] %s6669_s12 }
   0xe   :  { %6712 = sst [smem:[#allocation45_spill]] %s6670_s13 }
   0xf   :  { %6713 = sst [smem:[#allocation46_spill]] %s6671_s14 }
  0x10   :  { %19 = vsyncpa [#allocation3], 0 }
  0x11   :  { %21 = vsyncpa [#allocation3 + $0x1], 0 }
  0x12   :  { %22 = vsyncpa [#allocation6], 0 }
  0x13   :  { %24 = vsyncpa [#allocation6 + $0x1], 0 }
  0x14   :  { %25 = vsyncpa [#allocation9], 0 }
  0x15   :  { %27 = vsyncpa [#allocation9 + $0x1], 0 }
  0x16   :  { %28 = vsyncpa [#allocation4], 0 }
  0x17   :  { %30 = vsyncpa [#allocation4 + $0x1], 0  ;;  %s5610_s29 = smov 0   ;;  %s5612_s30 = smov 0  }
  0x18   :  { %s5614_s15 = smov 0   ;;  %s5616_s16 = smov 0  }
  0x19   :  { %s5618_s17 = smov 0   ;;  %s5620_s18 = smov 0  }
  0x1a   :  { %s5622_s19 = smov 0   ;;  %s5624_s20 = smov 0  }
  0x1b   :  { %s5626_s21 = smov 0   ;;  %s5628_s22 = smov 0  }
  0x1c   :  { %s5630_s23 = smov 0  }
  0x1d LB: > { %6714 = sst [smem:[#allocation15_spill]] %s5480_s30  ;;  %s45_s24 = sadd.s32 1, %s5508_s21  ;;  %s5516_s23 = sphi %s5630_s23, %s36_s23   ;;  %s5512_s22 = sphi %s5628_s22, %s6795_s22   ;;  %s5508_s21 = sphi %s5626_s21, %s6794_s21   ;;  %s5504_s20 = sphi %s5624_s20, %s6793_s20   ;;  %s5500_s19 = sphi %s5622_s19, %s6792_s19   ;;  %s5496_s18 = sphi %s5620_s18, %s6791_s18   ;;  %s5492_s17 = sphi %s5618_s17, %s6790_s17   ;;  %s5488_s16 = sphi %s5616_s16, %s6789_s16   ;;  %s5484_s15 = sphi %s5614_s15, %s6788_s15   ;;  %s5480_s30 = sphi %s5612_s30, %s6787_s30   ;;  %s5476_s29 = sphi %s5610_s29, %s6786_s29  }
  0x1e   : > { %6715 = sst [smem:[#allocation16_spill]] %s5484_s15  ;;  %p6676_p0 = scmp.eq.s32.totalorder %s5516_s23, 0 }
  0x1f   : > { %6716 = sst [smem:[#allocation17_spill]] %s5488_s16  ;;  %p5667_p1 = scmp.ge.s32.totalorder %s45_s24, 2 }
  0x20   : > { %6717 = sst [smem:[#allocation18_spill]] %s5492_s17  ;;  %s107_s26 = sadd.s32 1, %s5484_s15 }
  0x21   : > { %6718 = sst [smem:[#allocation19_spill]] %s5496_s18  ;;  %p114_p2 = scmp.ne.s32.totalorder %s5484_s15, %s5480_s30 }
  0x22   : > { %6719 = sst [smem:[#allocation20_spill]] %s5500_s19  ;;  %s6797_s24 = smov (%p5667_p1, %s45_s24), 0 }
  0x23   : > { %6720 = sst [smem:[#allocation21_spill]] %s5504_s20  ;;  %p116_p4 = por %p114_p2, %p6676_p0 }
  0x24   : > { %6721 = sst [smem:[#allocation22_spill]] %s5508_s21  ;;  %s104_s27 = ssub.s32 %s5508_s21, %s6797_s24 }
  0x25   : > { %6722 = sst [smem:[#allocation23_spill]] %s5512_s22  ;;  %p6675_p5 = scmp.lt.s32.totalorder %s5516_s23, 4 }
  0x26   : > { %6723 = sst [smem:[#allocation24_spill]] %s5516_s23  ;;  %p105_p6 = scmp.eq.s32.totalorder %s104_s27, 0 }
  0x27   : > { %s6724_s25 = scalar_select %p5667_p1, 1, 0 }
  0x28   : > { %6725 = sst [smem:[#allocation25_spill]] %s6797_s24  ;;  %s483_s28 = sand.u32 1, %s5516_s23  }
  0x29   : > { %s5687_s14 = sand.u32 1, %s5484_s15   ;;  %p5695_p7 = pnand %p6675_p5, %p116_p4 }
  0x2a   : > { %s5690_s13 = scalar_select %p105_p6, %s5484_s15, %s107_s26  }
  0x2b   : > { %s4721_s12 = smul.u32 768, %s5687_s14  ;;  %s6728_s2 = sld [smem:[#allocation34_spill]] }
  0x2c   : > { %6726 = sst [smem:[#allocation26_spill]] %s5690_s13  ;;  %s4722_s11 = smul.u32 12288, %s5508_s21 }
  0x2d   : > { %s6727_s9 = scalar_select %p5695_p7, 1, 0 }
  0x2e   : > { %s487_s27 = scalar_lea.vmem [#allocation5], %s4721_s12  ;;  %s5707_s13 = scalar_lea.sflag [#allocation6], %s483_s28 }
  0x2f   : > { %s494_s26 = sshll.u32 %s487_s27, 4  ;;  %p5713_p9 = pneg %p5695_p7  ;;  %s5705_s26 = int_to_ptr.vmem [resolvable:$true] %s494_s26 }
  0x31   : > { %s5703_s24 = scalar_lea.hbm %s6728_s2, %s4722_s11  ;;  %s5271_s11 = scalar_lea.hbm %s6728_s2, 24576 }
  0x32   : > { %s5266_s15 = scalar_lea.hbm %s5703_s24, 12288  ;;  %p5272_p12 = scmp.lt.u32.totalorder %s5703_s24, %s6728_s2 }
  0x33   : > { %p5267_p8 = scmp.ne.s32.totalorder %s5703_s24, %s5266_s15  ;;  %p5273_p13 = scmp.lt.u32.totalorder %s5271_s11, %s5266_s15 }
  0x34   : > { %p5275_p4 = scmp.lt.u32.totalorder %s5266_s15, %s5703_s24 }
  0x35   : > { %p5269_p10 = pnand %p5713_p9, %p5267_p8  ;;  %p5274_p2 = por %p5273_p13, %p5272_p12 }
  0x37   : > { %p5270_p11 = pneg %p5269_p10  ;;  %p5276_p6 = por %p5275_p4, %p5274_p2 }
  0x39   : > { %p5277_p5 = pnand %p5276_p6, %p5270_p11 }
  0x3b   : > { %5280 = shalt.err (!%p5277_p5)
}
  0x3c   : > { %s5281_s28 = scalar_lea.vmem %s5705_s26, 12288  ;;  %s5518_s6 = smov [#allocation5]  }
  0x3d   : > { %p5282_p8 = scmp.ne.s32.totalorder %s5705_s26, %s5281_s28  ;;  %s5286_s7 = sshll.u32 %s5518_s6, 4  ;;  %s5287_s7 = int_to_ptr.vmem [resolvable:$false] %s5286_s7 }
  0x3e   : > { %s5288_s12 = scalar_lea.vmem %s5287_s7, 24576  ;;  %p5289_p0 = scmp.lt.s32.totalorder %s5705_s26, %s5287_s7 }
  0x3f   : > { %p5284_p10 = pnand %p5282_p8, %p5713_p9  ;;  %p5290_p1 = scmp.lt.s32.totalorder %s5288_s12, %s5281_s28 }
  0x41   : > { %p5285_p3 = pneg %p5284_p10  ;;  %p5291_p12 = por %p5290_p1, %p5289_p0 }
  0x43   : > { %p5292_p13 = pnand %p5291_p12, %p5285_p3 }
  0x45   : > { %5295 = shalt.err (!%p5292_p13)
}
  0x46   : > { %s5519_s15 = smov 384   ;;  %s5520_s11 = smov 24  }
  0x47   : > { %4741 = dma.hbm_to_vmem [thread:$0]  (!%p5695_p7), %s5703_s24, 12288, %s5705_s26, %s5707_s13, %s5519_s15, %s5519_s15, %s5520_s11  }
  0x48   : > { %p4382_p0 = scmp.ge.s32.totalorder %s5516_s23, 1  ;;  %p608_p1 = scmp.lt.s32.totalorder %s5516_s23, 5 }
  0x49   : > { %s5744_s28 = sadd.s32 4294967295, %s5516_s23   ;;  %s4369_s6 = sadd.s32 4294967294, %s5516_s23  }
  0x4a   : > { %p5739_p3 = pnand %p4382_p0, %p608_p1  ;;  %s48_s7 = sadd.s32 1, %s5512_s22 }
  0x4b   : > { %p6731_p5 = scmp.ne.s32.totalorder %s6724_s25, 0  ;;  %s55_s24 = sadd.s32 1, %s5496_s18 }
  0x4c   : > { %s6730_s27 = scalar_select %p5739_p3, 1, 0 }
  0x4d   : > { %s6799_s7 = smov (!%p6731_p5, %s48_s7), %s5512_s22  ;;  %p62_p11 = scmp.ne.s32.totalorder %s5496_s18, %s5492_s17 }
  0x4e   : > { %p50_p2 = scmp.ge.s32.totalorder %s6799_s7, 2  ;;  %p68_p4 = scmp.ne.s32.totalorder %s5492_s17, %s5488_s16 }
  0x4f   : > { %p6732_p6 = scmp.eq.s32.totalorder %s5516_s23, 0  ;;  %p69_p10 = scmp.eq.s32.totalorder %s5744_s28, 0 }
  0x50   : > { %s6801_s7 = smov (%p50_p2, %s6799_s7), 0  ;;  %p6736_p13 = scmp.ne.s32.totalorder %s5480_s30, %s5476_s29 }
  0x51   : > { %p5758_p8 = por %p6732_p6, %p62_p11  ;;  %6734 = sst [smem:[#allocation27_spill]] %s6801_s7 }
  0x52   : > { %p5768_p12 = por %p69_p10, %p68_p4  ;;  %p5775_p0 = por %p6736_p13, %p69_p10 }
  0x53   : > { %s52_s15 = ssub.s32 %s5512_s22, %s6801_s7  ;;  %p430_p1 = scmp.eq.s32.totalorder %s5744_s28, 3 }
  0x54   : > { %s6735_s25 = scalar_select %p5768_p12, 1, 0 }
  0x55   : > { %s6737_s12 = scalar_select %p5775_p0, 1, 0 }
  0x56   : > { %p53_p5 = scmp.eq.s32.totalorder %s52_s15, 0  ;;  %p436_p6 = scmp.eq.s32.totalorder %s4369_s6, 3 }
  0x57   : > { %p5782_p3 = por %p430_p1, %p62_p11  ;;  %s456_s2 = sand.u32 1, %s5496_s18  }
  0x58   : > { %s5788_s3 = scalar_select %p53_p5, %s5496_s18, %s55_s24  }
  0x59   : > { %s6738_s11 = scalar_select %p5782_p3, 1, 0 }
  0x5a   : > { %6740 = sst [smem:[#allocation29_spill]] %s5788_s3  ;;  %p5793_p2 = por %p436_p6, %p68_p4 }
  0x5b   : > { %6739 = sst [smem:[#allocation28_spill]] %s6738_s11  ;;  %s4372_s29 = sshll.u32 %s456_s2, 5 }
  0x5c   : > { %s6741_s4 = scalar_select %p5793_p2, 1, 0 }
  0x5d   : > { %s4676_s1 = sshll.u32 %s5512_s22, 9  ;;  %s6743_s0 = sld [smem:[#allocation32_spill]] }
  0x5e   : > { %6742 = sst [smem:[#allocation30_spill]] %s6741_s4  ;;  %s460_s6 = scalar_lea.vmem [#allocation2], %s4372_s29 }
  0x5f   : > { %s467_s15 = sshll.u32 %s460_s6, 4  ;;  %p6744_p11 = scmp.lt.s32.totalorder %s5516_s23, 4  ;;  %s5811_s15 = int_to_ptr.vmem [resolvable:$true] %s467_s15 }
  0x60   : > { %s5813_s22 = scalar_lea.sflag [#allocation3], %s456_s2 }
  0x61   : > { %p5807_p10 = pnand %p6744_p11, %p5758_p8 }
  0x63   : > { %s5801_s7 = scalar_lea.hbm %s6743_s0, %s4676_s1  ;;  %p5298_p13 = pneg %p5807_p10 }
  0x64   : > { %s5296_s1 = scalar_lea.hbm %s5801_s7, 512  ;;  %s5301_s26 = scalar_lea.hbm %s6743_s0, 1024 }
  0x65   : > { %p5297_p4 = scmp.ne.s32.totalorder %s5801_s7, %s5296_s1  ;;  %p5302_p8 = scmp.lt.u32.totalorder %s5801_s7, %s6743_s0 }
  0x66   : > { %p5303_p6 = scmp.lt.u32.totalorder %s5301_s26, %s5296_s1  ;;  %p5305_p2 = scmp.lt.u32.totalorder %s5296_s1, %s5801_s7 }
  0x67   : > { %p5299_p1 = pnand %p5298_p13, %p5297_p4 }
  0x68   : > { %p5304_p11 = por %p5303_p6, %p5302_p8 }
  0x69   : > { %p5300_p5 = pneg %p5299_p1 }
  0x6a   : > { %p5306_p3 = por %p5305_p2, %p5304_p11 }
  0x6c   : > { %p5307_p0 = pnand %p5306_p3, %p5300_p5 }
  0x6e   : > { %5310 = shalt.err (!%p5307_p0)
}
  0x6f   : > { %s5311_s2 = scalar_lea.vmem %s5811_s15, 512  ;;  %s5521_s19 = smov [#allocation2]  }
  0x70   : > { %p5312_p4 = scmp.ne.s32.totalorder %s5811_s15, %s5311_s2  ;;  %s5316_s20 = sshll.u32 %s5521_s19, 4  ;;  %s5317_s20 = int_to_ptr.vmem [resolvable:$false] %s5316_s20 }
  0x71   : > { %s5318_s29 = scalar_lea.vmem %s5317_s20, 1024  ;;  %p5319_p7 = scmp.lt.s32.totalorder %s5811_s15, %s5317_s20 }
  0x72   : > { %p5314_p1 = pnand %p5312_p4, %p5298_p13  ;;  %p5320_p8 = scmp.lt.s32.totalorder %s5318_s29, %s5311_s2 }
  0x74   : > { %p5315_p12 = pneg %p5314_p1  ;;  %p5321_p6 = por %p5320_p8, %p5319_p7 }
  0x76   : > { %p5322_p2 = pnand %p5321_p6, %p5315_p12 }
  0x78   : > { %5325 = shalt.err (!%p5322_p2)
}
  0x79   : > { %s5522_s1 = smov 256   ;;  %s5523_s26 = smov 16  }
  0x7a   : > { %4738 = dma.hbm_to_vmem [thread:$0]  (!%p5807_p10), %s5801_s7, 512, %s5811_s15, %s5813_s22, %s5522_s1, %s5522_s1, %s5523_s26  }
  0x7b   : > { %s4376_s6 = sshll.u32 %s5687_s14, 9  ;;  %s4677_s2 = sshll.u32 %s5508_s21, 13 }
  0x7c   : > { %s6746_s8 = sld [smem:[#allocation40_spill]]  ;;  %s544_s0 = scalar_lea.vmem [#allocation7], %s4376_s6 }
  0x7d   : > { %s551_s3 = sshll.u32 %s544_s0, 4  ;;  %s5855_s3 = int_to_ptr.vmem [resolvable:$true] %s551_s3 }
  0x82   : > { %s5851_s29 = scalar_lea.hbm %s6746_s8, %s4677_s2  ;;  %s5331_s15 = scalar_lea.hbm %s6746_s8, 16384 }
  0x83   : > { %s5326_s24 = scalar_lea.hbm %s5851_s29, 8192  ;;  %p5332_p0 = scmp.lt.u32.totalorder %s5851_s29, %s6746_s8 }
  0x84   : > { %p5327_p7 = scmp.ne.s32.totalorder %s5851_s29, %s5326_s24  ;;  %p5333_p10 = scmp.lt.u32.totalorder %s5331_s15, %s5326_s24 }
  0x85   : > { %p5335_p5 = scmp.lt.u32.totalorder %s5326_s24, %s5851_s29 }
  0x86   : > { %p5329_p3 = pnand %p5327_p7, %p5713_p9  ;;  %p5334_p13 = por %p5333_p10, %p5332_p0 }
  0x88   : > { %p5330_p12 = pneg %p5329_p3  ;;  %p5336_p11 = por %p5335_p5, %p5334_p13 }
  0x8a   : > { %p5337_p4 = pnand %p5336_p11, %p5330_p12 }
  0x8c   : > { %5340 = shalt.err (!%p5337_p4)
}
  0x8d   : > { %s5341_s0 = scalar_lea.vmem %s5855_s3, 8192  ;;  %s5524_s22 = smov [#allocation7]  }
  0x8e   : > { %p5342_p1 = scmp.ne.s32.totalorder %s5855_s3, %s5341_s0  ;;  %s5346_s7 = sshll.u32 %s5524_s22, 4  ;;  %s5347_s7 = int_to_ptr.vmem [resolvable:$false] %s5346_s7 }
  0x8f   : > { %s5348_s19 = scalar_lea.vmem %s5347_s7, 16384  ;;  %p5349_p2 = scmp.lt.s32.totalorder %s5855_s3, %s5347_s7 }
  0x90   : > { %p5344_p8 = pnand %p5342_p1, %p5713_p9  ;;  %p5350_p7 = scmp.lt.s32.totalorder %s5348_s19, %s5341_s0 }
  0x92   : > { %p5345_p6 = pneg %p5344_p8  ;;  %p5351_p3 = por %p5350_p7, %p5349_p2 }
  0x94   : > { %p5352_p0 = pnand %p5351_p3, %p5345_p6 }
  0x96   : > { %5355 = shalt.err (!%p5352_p0)
}
  0x97   : > { %p6747_p12 = scmp.ne.s32.totalorder %s6727_s9, 0  ;;  %s6748_s10 = sld [smem:[#allocation42_spill]] }
  0x98   : > { %s572_s0 = scalar_lea.vmem [#allocation8], %s4376_s6  ;;  %s569_s7 = scalar_lea.sflag [#allocation9], %s5687_s14 }
  0x99   : > { %4744 = dma.hbm_to_vmem [thread:$0]  (!%p6747_p12), %s5851_s29, 8192, %s5855_s3, %s5707_s13, %s5522_s1, %s5522_s1, %s5523_s26  }
  0x9a   : > { %s579_s22 = sshll.u32 %s572_s0, 4  ;;  %s5891_s22 = int_to_ptr.vmem [resolvable:$true] %s579_s22 }
  0x9d   : > { %s5887_s20 = scalar_lea.hbm %s6748_s10, %s4677_s2  ;;  %s5361_s1 = scalar_lea.hbm %s6748_s10, 16384 }
  0x9e   : > { %s5356_s19 = scalar_lea.hbm %s5887_s20, 8192  ;;  %p5362_p11 = scmp.lt.u32.totalorder %s5887_s20, %s6748_s10 }
  0x9f   : > { %p5357_p10 = scmp.ne.s32.totalorder %s5887_s20, %s5356_s19  ;;  %p5363_p4 = scmp.lt.u32.totalorder %s5361_s1, %s5356_s19 }
  0xa0   : > { %p5365_p8 = scmp.lt.u32.totalorder %s5356_s19, %s5887_s20 }
  0xa1   : > { %p5359_p13 = pnand %p5357_p10, %p5713_p9  ;;  %p5364_p1 = por %p5363_p4, %p5362_p11 }
  0xa3   : > { %p5360_p5 = pneg %p5359_p13  ;;  %p5366_p6 = por %p5365_p8, %p5364_p1 }
  0xa5   : > { %p5367_p2 = pnand %p5366_p6, %p5360_p5 }
  0xa7   : > { %5370 = shalt.err (!%p5367_p2)
}
  0xa8   : > { %s5371_s6 = scalar_lea.vmem %s5891_s22, 8192  ;;  %s5525_s29 = smov [#allocation8]  }
  0xa9   : > { %p5372_p7 = scmp.ne.s32.totalorder %s5891_s22, %s5371_s6  ;;  %s5376_s24 = sshll.u32 %s5525_s29, 4  ;;  %s5377_s24 = int_to_ptr.vmem [resolvable:$false] %s5376_s24 }
  0xaa   : > { %s5378_s15 = scalar_lea.vmem %s5377_s24, 16384  ;;  %p5379_p10 = scmp.lt.s32.totalorder %s5891_s22, %s5377_s24 }
  0xab   : > { %p5374_p3 = pnand %p5372_p7, %p5713_p9  ;;  %p5380_p13 = scmp.lt.s32.totalorder %s5378_s15, %s5371_s6 }
  0xad   : > { %p5375_p0 = pneg %p5374_p3  ;;  %p5381_p11 = por %p5380_p13, %p5379_p10 }
  0xaf   : > { %p5382_p4 = pnand %p5381_p11, %p5375_p0 }
  0xb1   : > { %5385 = shalt.err (!%p5382_p4)
}
  0xb2   : > { %s5526_s0 = smov 128   ;;  %s5527_s19 = smov 8  }
  0xb3   : > { %4747 = dma.hbm_to_vmem [thread:$0]  (!%p6747_p12), %s5887_s20, 8192, %s5891_s22, %s569_s7, %s5526_s0, %s5526_s0, %s5527_s19  }
  0xb4   : > { %p6749_p9 = scmp.ne.s32.totalorder %s6730_s27, 0 }
  0xb6   : > { %612 = sbr.rel (%p6749_p9) target bundleno = 2752 (0xac0), region = 76 }
  0xbd   : > { %s5920_s5 = sand.u32 1, %s5492_s17   ;;  %p6750_p5 = scmp.ne.s32.totalorder %s6735_s25, 0 }
  0xbe   : > { %s6687_s3 = sshll.u32 %s5920_s5, 5  ;;  %s615_s13 = scalar_lea.sflag [#allocation3], %s5920_s5 }
  0xbf   : > { %s5926_s1 = scalar_lea.vmem [#allocation2], %s6687_s3 }
  0xc0   : > { %5459 = dma.done.wait (%p6750_p5), %s615_s13, 512  }
  0xc1   : > { %5461 = vsyncadd (%p6750_p5), %s615_s13, 4294966784  ;;  %s623_s9 = sand.u32 1, %s5744_s28   ;;  %s625_s14 = sand.u32 1, %s5480_s30  }
  0xc2   : > { %s4723_s27 = smul.u32 768, %s625_s14  ;;  %s624_s20 = scalar_lea.sflag [#allocation6], %s623_s9 }
  0xc3   : > { %p6751_p12 = scmp.ne.s32.totalorder %s6737_s12, 0 }
  0xc4   : > { %s5934_s22 = scalar_lea.vmem [#allocation5], %s4723_s27 }
  0xc5   : > { %5463 = dma.done.wait (%p6751_p12), %s624_s20, 20480  }
  0xc6   : > { %5465 = vsyncadd (%p6751_p12), %s624_s20, 4294946816  ;;  %s4384_s7 = sshll.u32 %s625_s14, 9  ;;  %s642_s25 = scalar_lea.sflag [#allocation9], %s625_s14 }
  0xc7   : > { %s5940_s26 = scalar_lea.vmem [#allocation7], %s4384_s7  ;;  %s5942_s2 = scalar_lea.vmem [#allocation8], %s4384_s7 }
  0xc8   : > { %6752 = sst [smem:[#allocation31_spill]] %s5942_s2 }
  0xc9   : > { %5467 = dma.done.wait (%p6751_p12), %s642_s25, 8192  }
  0xca   : > { %5469 = vsyncadd (%p6751_p12), %s642_s25, 4294959104  ;;  %s6753_s28 = sld [smem:[#allocation21_spill]]  ;;  %s6754_s6 = sld [smem:[#allocation20_spill]] }
  0xcb   : > { %s6756_s27 = sld [smem:[#allocation36_spill]]  ;;  %s6757_s8 = sld [smem:[#allocation35_spill]] }
  0xcc   : > { %s6760_s17 = sld [smem:[#allocation39_spill]]  ;;  %s6761_s16 = sld [smem:[#allocation43_spill]] }
  0xcd   : > { %s6763_s0 = sld [smem:[#allocation44_spill]]  ;;  %s6764_s12 = sld [smem:[#allocation45_spill]] }
  0xce   : > { %s6765_s18 = sshll.u32 %s5920_s5, 5 }
  0xd0   : > { %p745_p1 = scmp.lt.s32.totalorder %s6753_s28, 1  ;;  %p748_p8 = scmp.lt.s32.totalorder %s6754_s6, 1 }
  0xd1   : > { %p4396_p6 = scmp.ne.s32.totalorder %s6754_s6, 0 }
  0xd2   : > { %s6803_s28 = smov (!%p745_p1, %s6753_s28), 1  ;;  %v790_v0 = vld [vmem:[%s5926_s1] sm:$0xff] (!%p4396_p6)  ;;  %v791_v1 = vld [vmem:[%s5926_s1 + $0x8] sm:$0xff] (!%p4396_p6)  ;;  %v792_v2 = vld [vmem:[%s5926_s1 + $0x10] sm:$0xff] (!%p4396_p6) }
  0xd3   : > { %s749_s29 = scalar_select %p748_p8, %s6754_s6, 1 }
  0xd4   : > { %v793_v3 = vld [vmem:[%s5926_s1 + $0x18] sm:$0xff] (!%p4396_p6) }
  0xd5   : > { %s4724_s13 = smul.u32 6, %s749_s29  ;;  %s4679_s9 = sshll.u32 %s749_s29, 8 }
  0xd6   : > { %s5961_s20 = scalar_lea.vmem %s6756_s27, %s4679_s9  ;;  %s5963_s7 = sshll.u32 %s749_s29, 1 }
  0xd7   : > { %s5968_s24 = scalar_lea.vmem %s6757_s8, %s4724_s13  ;;  %s768_s3 = scalar_lea.vmem %s6760_s17, %s5963_s7 }
  0xd8   : > { %s4392_s25 = sshll.u32 %s749_s29, 2  ;;  %s776_s23 = scalar_lea.vmem %s6761_s16, %s5963_s7 }
  0xd9   : > { %s6762_s13 = sld [smem:[#allocation41_spill]]  ;;  %s780_s10 = scalar_lea.vmem %s6763_s0, %s5963_s7 }
  0xda   : > { %s784_s27 = scalar_lea.vmem %s6764_s12, %s5963_s7  ;;  %s6001_s17 = scalar_lea.vmem [#allocation10], %s6765_s18 }
  0xdb   : > { %789 = sbr.rel (%p4396_p6) target bundleno = 226 (0xe2), region = 96  ;;  %794 = vst [vmem:[%s6001_s17] sm:$0xff] (!%p4396_p6), %v790_v0  ;;  %795 = vst [vmem:[%s6001_s17 + $0x8] sm:$0xff] (!%p4396_p6), %v791_v1 }
  0xdc   : > { %796 = vst [vmem:[%s6001_s17 + $0x10] sm:$0xff] (!%p4396_p6), %v792_v2  ;;  %797 = vst [vmem:[%s6001_s17 + $0x18] sm:$0xff] (!%p4396_p6), %v793_v3 }
  0xdf   : > { %s5989_s2 = scalar_lea.vmem %s6762_s13, %s4392_s25 }
  0xe2 PF: > { %v4854_v4 = vld [vmem:[%s5934_s22 + $0x4] ss:$24 sps:$4 sm:$0xff]   ;;  %v4856_v5 = vld [vmem:[%s5934_s22] ss:$24 sps:$4 sm:$0xff]   ;;  %v4857_v6 = vld [vmem:[%s5934_s22 + $0x34] ss:$24 sps:$4 sm:$0xff]  }
  0xe3   : > { %1412 = vmatprep.subr.bf16.mxu1 %v4854_v4  ;;  %v4859_v7 = vld [vmem:[%s5934_s22 + $0x30] ss:$24 sps:$4 sm:$0xff]   ;;  %v4860_v8 = vld [vmem:[%s5934_s22 + $0x64] ss:$24 sps:$4 sm:$0xff]   ;;  %v4862_v9 = vld [vmem:[%s5934_s22 + $0x60] ss:$24 sps:$4 sm:$0xff]  }
  0xe4   : > { %1413 = vmatpush1.bf16.msra.mxu1 %v4856_v5  ;;  %v4863_v10 = vld [vmem:[%s5934_s22 + $0x94] ss:$24 sps:$4 sm:$0xff]   ;;  %v4865_v11 = vld [vmem:[%s5934_s22 + $0x90] ss:$24 sps:$4 sm:$0xff]   ;;  %v4866_v12 = vld [vmem:[%s5934_s22 + $0xc4] ss:$24 sps:$4 sm:$0xff]  }
  0xe5   : > { %1414 = vmatprep.subr.bf16.mxu1 %v4857_v6  ;;  %v4868_v13 = vld [vmem:[%s5934_s22 + $0xc0] ss:$24 sps:$4 sm:$0xff]   ;;  %v4869_v14 = vld [vmem:[%s5934_s22 + $0xf4] ss:$24 sps:$4 sm:$0xff]   ;;  %v4871_v15 = vld [vmem:[%s5934_s22 + $0xf0] ss:$24 sps:$4 sm:$0xff]  }
  0xe6   : > { %v4872_v16 = vld [vmem:[%s5934_s22 + $0x124] ss:$24 sps:$4 sm:$0xff]   ;;  %v799_v17 = vld [vmem:[%s6001_s17 + $0x8] sm:$0xff]  ;;  %v4874_v20 = vld [vmem:[%s5934_s22 + $0x120] ss:$24 sps:$4 sm:$0xff]   ;;  %vm5529_vm0 = vmmov 0  }
  0xe7   : > { %v801_v18 = vld [vmem:[%s6001_s17 + $0x18] sm:$0xff]  ;;  %v4875_v21 = vld [vmem:[%s5934_s22 + $0x154] ss:$24 sps:$4 sm:$0xff]   ;;  %v4877_v22 = vld [vmem:[%s5934_s22 + $0x150] ss:$24 sps:$4 sm:$0xff]   ;;  %s6766_s16 = sld [smem:[#allocation33_spill]] }
  0xe8   : > { %1415 = vmatpush1.bf16.msra.mxu1 %v4859_v7  ;;  %v803_v19 = vpack.c.bf16 %v801_v18, %v799_v17  ;;  %v4878_v23 = vld [vmem:[%s5934_s22 + $0x184] ss:$24 sps:$4 sm:$0xff]   ;;  %v4880_v24 = vld [vmem:[%s5934_s22 + $0x180] ss:$24 sps:$4 sm:$0xff]   ;;  %v4881_v25 = vld [vmem:[%s5934_s22 + $0x1b4] ss:$24 sps:$4 sm:$0xff]  }
  0xe9   : > { %1416 = vmatprep.subr.bf16.mxu1 %v4860_v8  ;;  %v4883_v26 = vld [vmem:[%s5934_s22 + $0x1b0] ss:$24 sps:$4 sm:$0xff]   ;;  %v4884_v27 = vld [vmem:[%s5934_s22 + $0x1e4] ss:$24 sps:$4 sm:$0xff]   ;;  %v4886_v28 = vld [vmem:[%s5934_s22 + $0x1e0] ss:$24 sps:$4 sm:$0xff]  }
  0xea   : > { %1444 = vmatprep.mubr.bf16.mxu1 %v803_v19  ;;  %1530 = vmatprep.mubr.bf16.mxu0 %v803_v19  ;;  %v4887_v29 = vld [vmem:[%s5934_s22 + $0x214] ss:$24 sps:$4 sm:$0xff]   ;;  %v4889_v30 = vld [vmem:[%s5934_s22 + $0x210] ss:$24 sps:$4 sm:$0xff]   ;;  %v4890_v31 = vld [vmem:[%s5934_s22 + $0x244] ss:$24 sps:$4 sm:$0xff]  }
  0xeb   : > { %v4892_v32 = vld [vmem:[%s5934_s22 + $0x240] ss:$24 sps:$4 sm:$0xff]   ;;  %v4893_v33 = vld [vmem:[%s5934_s22 + $0x274] ss:$24 sps:$4 sm:$0xff]   ;;  %v4895_v34 = vld [vmem:[%s5934_s22 + $0x270] ss:$24 sps:$4 sm:$0xff]  }
  0xec   : > { %1417 = vmatpush1.bf16.msra.mxu1 %v4862_v9  ;;  %v4896_v35 = vld [vmem:[%s5934_s22 + $0x2a4] ss:$24 sps:$4 sm:$0xff]   ;;  %v4898_v36 = vld [vmem:[%s5934_s22 + $0x2a0] ss:$24 sps:$4 sm:$0xff]   ;;  %v4899_v37 = vld [vmem:[%s5934_s22 + $0x2d4] ss:$24 sps:$4 sm:$0xff]  }
  0xed   : > { %1418 = vmatprep.subr.bf16.mxu1 %v4863_v10  ;;  %v4901_v38 = vld [vmem:[%s5934_s22 + $0x2d0] ss:$24 sps:$4 sm:$0xff]   ;;  %v798_v39 = vld [vmem:[%s6001_s17] sm:$0xff]  ;;  %v4907_v44 = vld [vmem:[%s5934_s22 + $0x3c] ss:$24 sps:$4 sm:$0xff]   ;;  %v5528_v10 = vmov 0.0   ;;  %s6767_s21 = scalar_lea.vmem %s6766_s16, %s6803_s28 }
  0xee   : > { %v800_v40 = vld [vmem:[%s6001_s17 + $0x10] sm:$0xff]  ;;  %v4904_v41 = vld [vmem:[%s5934_s22 + $0xc] ss:$24 sps:$4 sm:$0xff]   ;;  %v4902_v42 = vld [vmem:[%s5934_s22 + $0x8] ss:$24 sps:$4 sm:$0xff]   ;;  %vm2340_vm1 = vcmask 130048  }
  0xef   : > { %v6050_v43 = vpack.c.bf16 %v800_v40, %v798_v39  ;;  %v4905_v45 = vld [vmem:[%s5934_s22 + $0x38] ss:$24 sps:$4 sm:$0xff]   ;;  %v4910_v46 = vld [vmem:[%s5934_s22 + $0x6c] ss:$24 sps:$4 sm:$0xff]   ;;  %v4908_v47 = vld [vmem:[%s5934_s22 + $0x68] ss:$24 sps:$4 sm:$0xff]  }
  0xf0   : > { %1419 = vmatpush1.bf16.msra.mxu1 %v4865_v11  ;;  %v4913_v48 = vld [vmem:[%s5934_s22 + $0x9c] ss:$24 sps:$4 sm:$0xff]   ;;  %v4911_v49 = vld [vmem:[%s5934_s22 + $0x98] ss:$24 sps:$4 sm:$0xff]   ;;  %v4916_v50 = vld [vmem:[%s5934_s22 + $0xcc] ss:$24 sps:$4 sm:$0xff]  }
  0xf1   : > { %1420 = vmatprep.subr.bf16.mxu1 %v4866_v12  ;;  %v4914_v51 = vld [vmem:[%s5934_s22 + $0xc8] ss:$24 sps:$4 sm:$0xff]   ;;  %v4919_v52 = vld [vmem:[%s5934_s22 + $0xfc] ss:$24 sps:$4 sm:$0xff]   ;;  %v4917_v53 = vld [vmem:[%s5934_s22 + $0xf8] ss:$24 sps:$4 sm:$0xff]  }
  0xf2   : > { %v4922_v54 = vld [vmem:[%s5934_s22 + $0x12c] ss:$24 sps:$4 sm:$0xff]   ;;  %v4920_v55 = vld [vmem:[%s5934_s22 + $0x128] ss:$24 sps:$4 sm:$0xff]   ;;  %v4925_v56 = vld [vmem:[%s5934_s22 + $0x15c] ss:$24 sps:$4 sm:$0xff]  }
  0xf3   : > { %v4923_v57 = vld [vmem:[%s5934_s22 + $0x158] ss:$24 sps:$4 sm:$0xff]   ;;  %v4928_v58 = vld [vmem:[%s5934_s22 + $0x18c] ss:$24 sps:$4 sm:$0xff]   ;;  %v4926_v59 = vld [vmem:[%s5934_s22 + $0x188] ss:$24 sps:$4 sm:$0xff]  }
  0xf4   : > { %1421 = vmatpush1.bf16.msra.mxu1 %v4868_v13  ;;  %v4931_v60 = vld [vmem:[%s5934_s22 + $0x1bc] ss:$24 sps:$4 sm:$0xff]   ;;  %v4929_v61 = vld [vmem:[%s5934_s22 + $0x1b8] ss:$24 sps:$4 sm:$0xff]   ;;  %v4934_v62 = vld [vmem:[%s5934_s22 + $0x1ec] ss:$24 sps:$4 sm:$0xff]  }
  0xf5   : > { %1422 = vmatprep.subr.bf16.mxu1 %v4869_v14  ;;  %v4932_v63 = vld [vmem:[%s5934_s22 + $0x1e8] ss:$24 sps:$4 sm:$0xff]   ;;  %v4937_v0 = vld [vmem:[%s5934_s22 + $0x21c] ss:$24 sps:$4 sm:$0xff]   ;;  %v4935_v1 = vld [vmem:[%s5934_s22 + $0x218] ss:$24 sps:$4 sm:$0xff]  }
  0xf6   : > { %v4940_v2 = vld [vmem:[%s5934_s22 + $0x24c] ss:$24 sps:$4 sm:$0xff]   ;;  %v4938_v3 = vld [vmem:[%s5934_s22 + $0x248] ss:$24 sps:$4 sm:$0xff]   ;;  %v4943_v4 = vld [vmem:[%s5934_s22 + $0x27c] ss:$24 sps:$4 sm:$0xff]  }
  0xf7   : > { %v4941_v5 = vld [vmem:[%s5934_s22 + $0x278] ss:$24 sps:$4 sm:$0xff]   ;;  %v4946_v6 = vld [vmem:[%s5934_s22 + $0x2ac] ss:$24 sps:$4 sm:$0xff]   ;;  %v4944_v7 = vld [vmem:[%s5934_s22 + $0x2a8] ss:$24 sps:$4 sm:$0xff]  }
  0xf8   : > { %1423 = vmatpush1.bf16.msra.mxu1 %v4871_v15  ;;  %v4949_v8 = vld [vmem:[%s5934_s22 + $0x2dc] ss:$24 sps:$4 sm:$0xff]   ;;  %v4947_v9 = vld [vmem:[%s5934_s22 + $0x2d8] ss:$24 sps:$4 sm:$0xff]   ;;  %s6770_s6 = sld [smem:[#allocation31_spill]]  ;;  %s6779_s16 = sld [smem:[#allocation46_spill]] }
  0xf9   : > { %1424 = vmatprep.subr.bf16.mxu1 %v4872_v16  ;;  %v4950_v11 = vld [vmem:[%s5934_s22 + $0x14] ss:$24 sps:$4 sm:$0xff]   ;;  %v4952_v12 = vld [vmem:[%s5934_s22 + $0x10] ss:$24 sps:$4 sm:$0xff]   ;;  %v4953_v13 = vld [vmem:[%s5934_s22 + $0x44] ss:$24 sps:$4 sm:$0xff]  }
  0xfa   : > { %1498 = vmatprep.subr.bf16.mxu0 %v4950_v11  ;;  %v4955_v14 = vld [vmem:[%s5934_s22 + $0x40] ss:$24 sps:$4 sm:$0xff]   ;;  %v4956_v15 = vld [vmem:[%s5934_s22 + $0x74] ss:$24 sps:$4 sm:$0xff]   ;;  %v4958_v16 = vld [vmem:[%s5934_s22 + $0x70] ss:$24 sps:$4 sm:$0xff]  }
  0xfb   : > { %1499 = vmatpush1.bf16.msra.mxu0 %v4952_v12  ;;  %v4959_v17 = vld [vmem:[%s5934_s22 + $0xa4] ss:$24 sps:$4 sm:$0xff]   ;;  %v4961_v18 = vld [vmem:[%s5934_s22 + $0xa0] ss:$24 sps:$4 sm:$0xff]   ;;  %v4992_v39 = vld [vmem:[%s5934_s22 + $0x2b4] ss:$24 sps:$4 sm:$0xff]  }
  0xfc   : > { %1425 = vmatpush1.bf16.msra.mxu1 %v4874_v20  ;;  %1500 = vmatprep.subr.bf16.mxu0 %v4953_v13  ;;  %v4964_v20 = vld [vmem:[%s5934_s22 + $0xd0] ss:$24 sps:$4 sm:$0xff]   ;;  %s4088_s1 = scalar_lea.sflag [#allocation4], %s5920_s5 }
  0xfd   : > { %1426 = vmatprep.subr.bf16.mxu1 %v4875_v21  ;;  %v4965_v21 = vld [vmem:[%s5934_s22 + $0x104] ss:$24 sps:$4 sm:$0xff]   ;;  %v4994_v40 = vld [vmem:[%s5934_s22 + $0x2b0] ss:$24 sps:$4 sm:$0xff]  }
  0xfe   : > { %s6780_s11 = smov %s6779_s16 }
  0xff   : > { %1501 = vmatpush1.bf16.msra.mxu0 %v4955_v14 }
 0x100   : > { %1427 = vmatpush1.bf16.msra.mxu1 %v4877_v22  ;;  %1502 = vmatprep.subr.bf16.mxu0 %v4956_v15  ;;  %v4967_v22 = vld [vmem:[%s5934_s22 + $0x100] ss:$24 sps:$4 sm:$0xff]  }
 0x101   : > { %1428 = vmatprep.subr.bf16.mxu1 %v4878_v23  ;;  %v4968_v23 = vld [vmem:[%s5934_s22 + $0x134] ss:$24 sps:$4 sm:$0xff]  }
 0x103   : > { %1503 = vmatpush1.bf16.msra.mxu0 %v4958_v16 }
 0x104   : > { %1429 = vmatpush1.bf16.msra.mxu1 %v4880_v24  ;;  %1504 = vmatprep.subr.bf16.mxu0 %v4959_v17  ;;  %v4970_v24 = vld [vmem:[%s5934_s22 + $0x130] ss:$24 sps:$4 sm:$0xff]  }
 0x105   : > { %1430 = vmatprep.subr.bf16.mxu1 %v4881_v25  ;;  %v4971_v25 = vld [vmem:[%s5934_s22 + $0x164] ss:$24 sps:$4 sm:$0xff]  }
 0x107   : > { %1505 = vmatpush1.bf16.msra.mxu0 %v4961_v18 }
 0x108   : > { %1431 = vmatpush1.bf16.msra.mxu1 %v4883_v26  ;;  %v4973_v26 = vld [vmem:[%s5934_s22 + $0x160] ss:$24 sps:$4 sm:$0xff]  }
 0x109   : > { %1432 = vmatprep.subr.bf16.mxu1 %v4884_v27  ;;  %v4974_v27 = vld [vmem:[%s5934_s22 + $0x194] ss:$24 sps:$4 sm:$0xff]  }
 0x10c   : > { %1433 = vmatpush1.bf16.msra.mxu1 %v4886_v28  ;;  %v4976_v28 = vld [vmem:[%s5934_s22 + $0x190] ss:$24 sps:$4 sm:$0xff]  }
 0x10d   : > { %1434 = vmatprep.subr.bf16.mxu1 %v4887_v29  ;;  %v4977_v29 = vld [vmem:[%s5934_s22 + $0x1c4] ss:$24 sps:$4 sm:$0xff]  }
 0x110   : > { %1435 = vmatpush1.bf16.msra.mxu1 %v4889_v30  ;;  %v4979_v30 = vld [vmem:[%s5934_s22 + $0x1c0] ss:$24 sps:$4 sm:$0xff]  }
 0x111   : > { %1436 = vmatprep.subr.bf16.mxu1 %v4890_v31  ;;  %v4980_v31 = vld [vmem:[%s5934_s22 + $0x1f4] ss:$24 sps:$4 sm:$0xff]  }
 0x114   : > { %1437 = vmatpush1.bf16.msra.mxu1 %v4892_v32  ;;  %v4982_v32 = vld [vmem:[%s5934_s22 + $0x1f0] ss:$24 sps:$4 sm:$0xff]  }
 0x115   : > { %1438 = vmatprep.subr.bf16.mxu1 %v4893_v33  ;;  %v4983_v33 = vld [vmem:[%s5934_s22 + $0x224] ss:$24 sps:$4 sm:$0xff]  }
 0x118   : > { %1439 = vmatpush1.bf16.msra.mxu1 %v4895_v34  ;;  %v4985_v34 = vld [vmem:[%s5934_s22 + $0x220] ss:$24 sps:$4 sm:$0xff]  }
 0x119   : > { %1440 = vmatprep.subr.bf16.mxu1 %v4896_v35  ;;  %v4986_v35 = vld [vmem:[%s5934_s22 + $0x254] ss:$24 sps:$4 sm:$0xff]  }
 0x11c   : > { %1441 = vmatpush1.bf16.msra.mxu1 %v4898_v36  ;;  %v4988_v36 = vld [vmem:[%s5934_s22 + $0x250] ss:$24 sps:$4 sm:$0xff]  }
 0x11d   : > { %1442 = vmatprep.subr.bf16.mxu1 %v4899_v37  ;;  %v4989_v37 = vld [vmem:[%s5934_s22 + $0x284] ss:$24 sps:$4 sm:$0xff]  }
 0x120   : > { %1443 = vmatpush1.bf16.msra.mxu1 %v4901_v38  ;;  %v4991_v38 = vld [vmem:[%s5934_s22 + $0x280] ss:$24 sps:$4 sm:$0xff]  }
 0x121   : > { %1455 = vmatprep.subr.bf16.mxu1 %v4904_v41  ;;  %v4995_v41 = vld [vmem:[%s5934_s22 + $0x2e4] ss:$24 sps:$4 sm:$0xff]  }
 0x123   : > { %1445 = vmatmul.mubr.bf16.vlgmr.msra.gmra.mrb[0].mxu1 %v6050_v43 }
 0x124   : > { %1456 = vmatpush1.bf16.msra.mxu1 %v4902_v42  ;;  %1487 = vmatprep.mubr.bf16.mxu1 %v803_v19  ;;  %v4962_v19 = vld [vmem:[%s5934_s22 + $0xd4] ss:$24 sps:$4 sm:$0xff]   ;;  %v4997_v42 = vld [vmem:[%s5934_s22 + $0x2e0] ss:$24 sps:$4 sm:$0xff]   ;;  %s6768_s22 = sld [smem:[#allocation37_spill]] }
 0x125   : > { %1457 = vmatprep.subr.bf16.mxu1 %v4907_v44  ;;  %1506 = vmatprep.subr.bf16.mxu0 %v4962_v19  ;;  %v902_v44 = vlaneseq }
 0x126   : > { %1507 = vmatpush1.bf16.msra.mxu0 %v4964_v20 }
 0x127   : > { %1508 = vmatprep.subr.bf16.mxu0 %v4965_v21 }
 0x128   : > { %1458 = vmatpush1.bf16.msra.mxu1 %v4905_v45  ;;  %v6123_v45 = vshrl.u32 %v902_v44, 7 }
 0x129   : > { %1459 = vmatprep.subr.bf16.mxu1 %v4910_v46  ;;  %v5530_v46 = vmov 1983009808  }
 0x12a   : > { %1509 = vmatpush1.bf16.msra.mxu0 %v4967_v22  ;;  %s6769_s28 = scalar_lea.vmem %s6768_s22, %s5963_s7 }
 0x12b   : > { %1510 = vmatprep.subr.bf16.mxu0 %v4968_v23 }
 0x12c   : > { %1460 = vmatpush1.bf16.msra.mxu1 %v4908_v47  ;;  %v1543_v47 = vunpack.c.l.s4 %v5530_v46 }
 0x12d   : > { %1461 = vmatprep.subr.bf16.mxu1 %v4913_v48  ;;  %v6126_v48 = vsub.s32 0, %v6123_v45 }
 0x12e   : > { %1511 = vmatpush1.bf16.msra.mxu0 %v4970_v24 }
 0x12f   : > { %1512 = vmatprep.subr.bf16.mxu0 %v4971_v25 }
 0x130   : > { %1462 = vmatpush1.bf16.msra.mxu1 %v4911_v49  ;;  %v6129_v49 = vld [vmem:[%s5968_s24] sm:$0x3f]  ;;  %s6771_s24 = sld [smem:[#allocation38_spill]] }
 0x131   : > { %1463 = vmatprep.subr.bf16.mxu1 %v4916_v50  ;;  %v6132_v50 = vsub.s32 1, %v6123_v45 }
 0x132   : > { %1513 = vmatpush1.bf16.msra.mxu0 %v4973_v26 }
 0x133   : > { %1514 = vmatprep.subr.bf16.mxu0 %v4974_v27 }
 0x134   : > { %1464 = vmatpush1.bf16.msra.mxu1 %v4914_v51  ;;  %v5531_v51 = vmov 1934713408  }
 0x135   : > { %1465 = vmatprep.subr.bf16.mxu1 %v4919_v52  ;;  %v1574_v52 = vunpack.c.l.s4 %v5531_v51 }
 0x136   : > { %1515 = vmatpush1.bf16.msra.mxu0 %v4976_v28  ;;  %s6772_s25 = scalar_lea.vmem %s6771_s24, %s5963_s7  ;;  %s4101_s7 = sshll.u32 %s6001_s17, 4  ;;  %s6590_s7 = int_to_ptr.vmem [resolvable:$true] %s4101_s7 }
 0x137   : > { %1516 = vmatprep.subr.bf16.mxu0 %v4977_v29  ;;  %s5386_s22 = scalar_lea.vmem %s6590_s7, 512 }
 0x138   : > { %1466 = vmatpush1.bf16.msra.mxu1 %v4917_v53  ;;  %v905_v53 = vrot.slane %v6129_v49, %v6126_v48  ;;  %p5387_p2 = scmp.ne.s32.totalorder %s6590_s7, %s5386_s22 }
 0x139   : > { %1467 = vmatprep.subr.bf16.mxu1 %v4922_v54  ;;  %v909_v54 = vrot.slane %v6129_v49, %v6132_v50 }
 0x13a   : > { %1517 = vmatpush1.bf16.msra.mxu0 %v4979_v30 }
 0x13b   : > { %1518 = vmatprep.subr.bf16.mxu0 %v4980_v31 }
 0x13c   : > { %1468 = vmatpush1.bf16.msra.mxu1 %v4920_v55 }
 0x13d   : > { %1469 = vmatprep.subr.bf16.mxu1 %v4925_v56 }
 0x13e   : > { %1519 = vmatpush1.bf16.msra.mxu0 %v4982_v32 }
 0x13f   : > { %1520 = vmatprep.subr.bf16.mxu0 %v4983_v33 }
 0x140   : > { %1470 = vmatpush1.bf16.msra.mxu1 %v4923_v57  ;;  %v1575_v57 = vunpack.c.0.s8 %v1574_v52 }
 0x141   : > { %1471 = vmatprep.subr.bf16.mxu1 %v4928_v58 }
 0x142   : > { %1521 = vmatpush1.bf16.msra.mxu0 %v4985_v34 }
 0x143   : > { %1522 = vmatprep.subr.bf16.mxu0 %v4986_v35 }
 0x144   : > { %1472 = vmatpush1.bf16.msra.mxu1 %v4926_v59 }
 0x145   : > { %1473 = vmatprep.subr.bf16.mxu1 %v4931_v60 }
 0x146   : > { %1523 = vmatpush1.bf16.msra.mxu0 %v4988_v36 }
 0x147   : > { %1524 = vmatprep.subr.bf16.mxu0 %v4989_v37 }
 0x148   : > { %1474 = vmatpush1.bf16.msra.mxu1 %v4929_v61 }
 0x149   : > { %1475 = vmatprep.subr.bf16.mxu1 %v4934_v62 }
 0x14a   : > { %1525 = vmatpush1.bf16.msra.mxu0 %v4991_v38 }
 0x14b   : > { %1526 = vmatprep.subr.bf16.mxu0 %v4992_v39 }
 0x14c   : > { %1476 = vmatpush1.bf16.msra.mxu1 %v4932_v63 }
 0x14d   : > { %1477 = vmatprep.subr.bf16.mxu1 %v4937_v0 }
 0x14e   : > { %1527 = vmatpush1.bf16.msra.mxu0 %v4994_v40 }
 0x14f   : > { %1528 = vmatprep.subr.bf16.mxu0 %v4995_v41 }
 0x150   : > { %1478 = vmatpush1.bf16.msra.mxu1 %v4935_v1 }
 0x151   : > { %1479 = vmatprep.subr.bf16.mxu1 %v4940_v2  ;;  %v6144_v2 = vsub.s32 %v1575_v57, %v6123_v45 }
 0x152   : > { %1529 = vmatpush1.bf16.msra.mxu0 %v4997_v42 }
 0x153   : > { %4689 = vmatprep.subr.bf16.mxu0 %v5528_v10 }
 0x154   : > { %1480 = vmatpush1.bf16.msra.mxu1 %v4938_v3 }
 0x155   : > { %1481 = vmatprep.subr.bf16.mxu1 %v4943_v4  ;;  %1531 = vmatmul.mubr.bf16.vlgmr.msra.gmra.mrb[0].mxu0 %v6050_v43 }
 0x156   : > { %4691 = vmatprep.mubr.msk.bf16.mxu0 %vm5529_vm0, %v5528_v10 }
 0x158   : > { %1482 = vmatpush1.bf16.msra.mxu1 %v4941_v5 }
 0x159   : > { %1483 = vmatprep.subr.bf16.mxu1 %v4946_v6 }
 0x15c   : > { %1484 = vmatpush1.bf16.msra.mxu1 %v4944_v7 }
 0x15d   : > { %1485 = vmatprep.subr.bf16.mxu1 %v4949_v8 }
 0x160   : > { %1486 = vmatpush1.bf16.msra.mxu1 %v4947_v9 }
 0x161   : > { %4701 = vmatprep.subr.bf16.mxu1 %v5528_v10 }
 0x163   : > { %1488 = vmatmul.mubr.bf16.vlgmr.msra.gmra.mrb[4].mxu1 %v6050_v43  ;;  %v1544_v43 = vunpack.c.0.s8 %v1543_v47 }
 0x164   : > { %4703 = vmatprep.mubr.msk.bf16.mxu1 %vm5529_vm0, %v5528_v10 }
 0x165   : > { %v6139_v55 = vsub.s32 %v1544_v43, %v6123_v45 }
 0x1f6   : > { %v1446_v56 = vpop.f32.mrb[0].mxu1 }
 0x1f7   : > { %v1447_v58 = vadd.f32 %v1446_v56, %v905_v53  ;;  %v1448_v59 = vpop.f32.mrb[1].mxu1 }
 0x1f8   : > { %v1449_v60 = vadd.f32 %v1448_v59, %v909_v54  ;;  %v1450_v61 = vpop.f32.mrb[2].mxu1 }
 0x1f9   : > { %v1541_v62 = vcombine.high %v1447_v58, %v5528_v10  ;;  %v1548_v63 = vrot.slane %v1447_v58, %v6139_v55  ;;  %v1451_v0 = vadd.f32 %v1450_v61, %v905_v53  ;;  %v1452_v1 = vpop.f32.mrb[3].mxu1 }
 0x1fa   : > { %v1556_v3 = vcombine.high %v1449_v60, %v5528_v10  ;;  %v1563_v4 = vrot.slane %v1449_v60, %v6139_v55  ;;  %v1453_v5 = vadd.f32 %v1452_v1, %v909_v54 }
 0x1fb   : > { %v1555_v6 = vrot.slane %v1541_v62, %v6139_v55  ;;  %v1607_v7 = vcombine.high %v1451_v0, %v5528_v10  ;;  %v1614_v8 = vrot.slane %v1451_v0, %v6139_v55 }
 0x1fc   : > { %v1570_v9 = vrot.slane %v1556_v3, %v6139_v55  ;;  %v1571_v11 = vcombine.low %v1548_v63, %v1563_v4  ;;  %v1572_v12 = vcombine.high %v1548_v63, %v1563_v4  ;;  %v1622_v13 = vcombine.high %v1453_v5, %v5528_v10 }
 0x1fd   : > { %v1621_v14 = vrot.slane %v1607_v7, %v6139_v55  ;;  %v1629_v15 = vrot.slane %v1453_v5, %v6139_v55  ;;  %v912_v3 = vsub.s32 2, %v6123_v45  ;;  %v916_v4 = vsub.s32 3, %v6123_v45 }
 0x1fe   : > { %v1579_v16 = vrot.slane %v1571_v11, %v6144_v2  ;;  %v1586_v17 = vrot.slane %v1572_v12, %v6144_v2  ;;  %v1587_v18 = vcombine.low %v1555_v6, %v1570_v9  ;;  %v1588_v19 = vcombine.high %v1555_v6, %v1570_v9 }
 0x1ff   : > { %v1636_v20 = vrot.slane %v1622_v13, %v6139_v55  ;;  %v1637_v21 = vcombine.low %v1614_v8, %v1629_v15  ;;  %v1638_v22 = vcombine.high %v1614_v8, %v1629_v15  ;;  %v913_v5 = vrot.slane %v6129_v49, %v912_v3 }
 0x200   : > { %v1595_v23 = vrot.slane %v1587_v18, %v6144_v2  ;;  %v1602_v24 = vrot.slane %v1588_v19, %v6144_v2  ;;  %v1673_v25 = vcombine.low %v1579_v16, %v1586_v17  ;;  %v4493_v26 = vcombine.high %v1579_v16, %v1586_v17 }
 0x201   : > { %v1645_v27 = vrot.slane %v1637_v21, %v6144_v2  ;;  %v1652_v28 = vrot.slane %v1638_v22, %v6144_v2  ;;  %v1653_v29 = vcombine.low %v1621_v14, %v1636_v20  ;;  %v1654_v30 = vcombine.high %v1621_v14, %v1636_v20 }
 0x202   : > { %v1680_v31 = vrot.slane %v1673_v25, %v6139_v55  ;;  %v1688_v32 = vrot.slane %v4493_v26, %v6139_v55  ;;  %v1689_v33 = vcombine.low %v1595_v23, %v1602_v24  ;;  %v4494_v34 = vcombine.high %v1595_v23, %v1602_v24 }
 0x203   : > { %v1661_v35 = vrot.slane %v1653_v29, %v6144_v2  ;;  %v1668_v36 = vrot.slane %v1654_v30, %v6144_v2  ;;  %v1723_v37 = vcombine.low %v1645_v27, %v1652_v28  ;;  %v4495_v38 = vcombine.high %v1645_v27, %v1652_v28 }
 0x204   : > { %v1696_v39 = vrot.slane %v1689_v33, %v6139_v55  ;;  %v1704_v40 = vrot.slane %v4494_v34, %v6139_v55  ;;  %v1705_v41 = vcombine.low %v1680_v31, %v1688_v32  ;;  %v917_v6 = vrot.slane %v6129_v49, %v916_v4 }
 0x205   : > { %v1730_v42 = vrot.slane %v1723_v37, %v6139_v55  ;;  %v1738_v44 = vrot.slane %v4495_v38, %v6139_v55  ;;  %v1739_v46 = vcombine.low %v1661_v35, %v1668_v36  ;;  %v4496_v47 = vcombine.high %v1661_v35, %v1668_v36 }
 0x206   : > { %v1713_v43 = vcombine.low %v1696_v39, %v1704_v40  ;;  %v1712_v54 = vrot.slane %v1705_v41, %v6144_v2 }
 0x207   : > { %v1746_v51 = vrot.slane %v1739_v46, %v6139_v55  ;;  %v1754_v52 = vrot.slane %v4496_v47, %v6139_v55  ;;  %v1755_v53 = vcombine.low %v1730_v42, %v1738_v44 }
 0x208   : > { %v1720_v56 = vrot.slane %v1713_v43, %v6144_v2 }
 0x209   : > { %v1763_v57 = vcombine.low %v1746_v51, %v1754_v52  ;;  %v1762_v60 = vrot.slane %v1755_v53, %v6144_v2 }
 0x20a   : > { %v1721_v58 = vcombine.low %v1712_v54, %v1720_v56  ;;  %v1722_v59 = vcombine.high %v1712_v54, %v1720_v56 }
 0x20b   : > { %v1770_v61 = vrot.slane %v1763_v57, %v6144_v2 }
 0x20d   : > { %v1771_v62 = vcombine.low %v1762_v60, %v1770_v61  ;;  %v1772_v63 = vcombine.high %v1762_v60, %v1770_v61 }
 0x20f   : > { %v6176_v0 = vpack.c.bf16 %v1771_v62, %v1721_v58  ;;  %v6178_v1 = vpack.c.bf16 %v1772_v63, %v1722_v59 }
 0x236   : > { %v1489_v7 = vpop.f32.mrb[4].mxu1 }
 0x237   : > { %v1490_v8 = vadd.f32 %v1489_v7, %v913_v5  ;;  %v1491_v9 = vpop.f32.mrb[5].mxu1 }
 0x238   : > { %v1492_v11 = vadd.f32 %v1491_v9, %v917_v6  ;;  %v1493_v12 = vpop.f32.mrb[6].mxu1 }
 0x239   : > { %v1773_v13 = vcombine.high %v1490_v8, %v5528_v10  ;;  %v1780_v14 = vrot.slane %v1490_v8, %v6139_v55  ;;  %v1494_v15 = vadd.f32 %v1493_v12, %v913_v5  ;;  %v1495_v16 = vpop.f32.mrb[7].mxu1 }
 0x23a   : > { %v1788_v17 = vcombine.high %v1492_v11, %v5528_v10  ;;  %v1795_v18 = vrot.slane %v1492_v11, %v6139_v55  ;;  %v1496_v19 = vadd.f32 %v1495_v16, %v917_v6 }
 0x23b   : > { %v1787_v20 = vrot.slane %v1773_v13, %v6139_v55  ;;  %v1839_v21 = vcombine.high %v1494_v15, %v5528_v10  ;;  %v1846_v22 = vrot.slane %v1494_v15, %v6139_v55 }
 0x23c   : > { %v1802_v23 = vrot.slane %v1788_v17, %v6139_v55  ;;  %v1803_v24 = vcombine.low %v1780_v14, %v1795_v18  ;;  %v1804_v25 = vcombine.high %v1780_v14, %v1795_v18  ;;  %v1854_v26 = vcombine.high %v1496_v19, %v5528_v10 }
 0x23d   : > { %v1853_v27 = vrot.slane %v1839_v21, %v6139_v55  ;;  %v1861_v28 = vrot.slane %v1496_v19, %v6139_v55  ;;  %v920_v21 = vsub.s32 4, %v6123_v45 }
 0x23e   : > { %v1811_v29 = vrot.slane %v1803_v24, %v6144_v2  ;;  %v1818_v30 = vrot.slane %v1804_v25, %v6144_v2  ;;  %v1819_v31 = vcombine.low %v1787_v20, %v1802_v23  ;;  %v1820_v32 = vcombine.high %v1787_v20, %v1802_v23  ;;  %v1532_v25 = vpop.f32.mrb[0].mxu0 }
 0x23f   : > { %v1868_v33 = vrot.slane %v1854_v26, %v6139_v55  ;;  %v1869_v34 = vcombine.low %v1846_v22, %v1861_v28  ;;  %v1870_v35 = vcombine.high %v1846_v22, %v1861_v28  ;;  %v924_v22 = vsub.s32 5, %v6123_v45 }
 0x240   : > { %v1827_v36 = vrot.slane %v1819_v31, %v6144_v2  ;;  %v1834_v37 = vrot.slane %v1820_v32, %v6144_v2  ;;  %v1905_v38 = vcombine.low %v1811_v29, %v1818_v30  ;;  %v4497_v39 = vcombine.high %v1811_v29, %v1818_v30 }
 0x241   : > { %v1877_v40 = vrot.slane %v1869_v34, %v6144_v2  ;;  %v1884_v41 = vrot.slane %v1870_v35, %v6144_v2  ;;  %v1885_v42 = vcombine.low %v1853_v27, %v1868_v33  ;;  %v1886_v44 = vcombine.high %v1853_v27, %v1868_v33  ;;  %v1534_v27 = vpop.f32.mrb[1].mxu0 }
 0x242   : > { %v1912_v46 = vrot.slane %v1905_v38, %v6139_v55  ;;  %v1920_v47 = vrot.slane %v4497_v39, %v6139_v55  ;;  %v1921_v43 = vcombine.low %v1827_v36, %v1834_v37  ;;  %v4498_v51 = vcombine.high %v1827_v36, %v1834_v37  ;;  %v1536_v29 = vpop.f32.mrb[2].mxu0 }
 0x243   : > { %v1893_v52 = vrot.slane %v1885_v42, %v6144_v2  ;;  %v1900_v53 = vrot.slane %v1886_v44, %v6144_v2  ;;  %v1955_v54 = vcombine.low %v1877_v40, %v1884_v41  ;;  %v4499_v56 = vcombine.high %v1877_v40, %v1884_v41  ;;  %v1538_v32 = vpop.f32.mrb[3].mxu0 }
 0x244   : > { %v1928_v57 = vrot.slane %v1921_v43, %v6139_v55  ;;  %v1936_v58 = vrot.slane %v4498_v51, %v6139_v55  ;;  %v1937_v59 = vcombine.low %v1912_v46, %v1920_v47  ;;  %v921_v23 = vrot.slane %v6129_v49, %v920_v21 }
 0x245   : > { %v1962_v60 = vrot.slane %v1955_v54, %v6139_v55  ;;  %v1970_v61 = vrot.slane %v4499_v56, %v6139_v55  ;;  %v1971_v62 = vcombine.low %v1893_v52, %v1900_v53  ;;  %v4500_v63 = vcombine.high %v1893_v52, %v1900_v53 }
 0x246   : > { %v1945_v5 = vcombine.low %v1928_v57, %v1936_v58  ;;  %v1944_v9 = vrot.slane %v1937_v59, %v6144_v2  ;;  %v925_v24 = vrot.slane %v6129_v49, %v924_v22  ;;  %v1533_v26 = vadd.f32 %v1532_v25, %v921_v23 }
 0x247   : > { %v1978_v6 = vrot.slane %v1971_v62, %v6139_v55  ;;  %v1986_v7 = vrot.slane %v4500_v63, %v6139_v55  ;;  %v1987_v8 = vcombine.low %v1962_v60, %v1970_v61  ;;  %v1537_v31 = vadd.f32 %v1536_v29, %v921_v23 }
 0x248   : > { %v1952_v11 = vrot.slane %v1945_v5, %v6144_v2  ;;  %v1535_v28 = vadd.f32 %v1534_v27, %v925_v24  ;;  %v2012_v30 = vrot.slane %v1533_v26, %v6139_v55  ;;  %v1539_v34 = vadd.f32 %v1538_v32, %v925_v24 }
 0x249   : > { %v1995_v12 = vcombine.low %v1978_v6, %v1986_v7  ;;  %v1994_v15 = vrot.slane %v1987_v8, %v6144_v2  ;;  %v2071_v49 = vcombine.high %v1537_v31, %v5528_v10  ;;  %v2078_v36 = vrot.slane %v1537_v31, %v6139_v55 }
 0x24a   : > { %v1953_v13 = vcombine.low %v1944_v9, %v1952_v11  ;;  %v1954_v14 = vcombine.high %v1944_v9, %v1952_v11  ;;  %v2027_v33 = vrot.slane %v1535_v28, %v6139_v55  ;;  %v2086_v40 = vcombine.high %v1539_v34, %v5528_v10 }
 0x24b   : > { %v2002_v16 = vrot.slane %v1995_v12, %v6144_v2  ;;  %v2085_v41 = vrot.slane %v2071_v49, %v6139_v55  ;;  %v2093_v42 = vrot.slane %v1539_v34, %v6139_v55 }
 0x24c   : > { %v2035_v38 = vcombine.low %v2012_v30, %v2027_v33  ;;  %v2036_v39 = vcombine.high %v2012_v30, %v2027_v33  ;;  %v2100_v51 = vrot.slane %v2086_v40, %v6139_v55  ;;  %v2237_v33 = vld [vmem:[%s6767_s21] sm:$0x1] }
 0x24d   : > { %v2003_v17 = vcombine.low %v1994_v15, %v2002_v16  ;;  %v2004_v18 = vcombine.high %v1994_v15, %v2002_v16  ;;  %v2101_v52 = vcombine.low %v2078_v36, %v2093_v42  ;;  %v2102_v53 = vcombine.high %v2078_v36, %v2093_v42 }
 0x24e   : > { %v2043_v44 = vrot.slane %v2035_v38, %v6144_v2  ;;  %v2050_v46 = vrot.slane %v2036_v39, %v6144_v2  ;;  %v2117_v61 = vcombine.low %v2085_v41, %v2100_v51  ;;  %v2118_v62 = vcombine.high %v2085_v41, %v2100_v51 }
 0x24f   : > { %v2242_v19 = vpack.c.bf16 %v2003_v17, %v1953_v13  ;;  %v2243_v20 = vpack.c.bf16 %v2004_v18, %v1954_v14  ;;  %v2109_v59 = vrot.slane %v2101_v52, %v6144_v2  ;;  %v2116_v60 = vrot.slane %v2102_v53, %v6144_v2 }
 0x250   : > { %v2137_v57 = vcombine.low %v2043_v44, %v2050_v46  ;;  %v4501_v58 = vcombine.high %v2043_v44, %v2050_v46  ;;  %v2125_v8 = vrot.slane %v2117_v61, %v6144_v2  ;;  %v2132_v9 = vrot.slane %v2118_v62, %v6144_v2 }
 0x251   : > { %4690 = vmatpush3.bf16.xpose.msra.mxu0 %v2242_v19  ;;  %v2187_v11 = vcombine.low %v2109_v59, %v2116_v60  ;;  %v4503_v12 = vcombine.high %v2109_v59, %v2116_v60  ;;  %v2238_v34 = vsub.f32 1.0, %v2237_v33 }
 0x252   : > { %4695 = vmatprep.subr.bf16.mxu0 %v5528_v10  ;;  %v2144_v63 = vrot.slane %v2137_v57, %v6139_v55  ;;  %v2152_v5 = vrot.slane %v4501_v58, %v6139_v55  ;;  %v2203_v18 = vcombine.low %v2125_v8, %v2132_v9  ;;  %v4504_v19 = vcombine.high %v2125_v8, %v2132_v9 }
 0x253   : > { %v2194_v16 = vrot.slane %v2187_v11, %v6139_v55  ;;  %v2202_v17 = vrot.slane %v4503_v12, %v6139_v55 }
 0x254   : > { %v2169_v15 = vcombine.low %v2144_v63, %v2152_v5  ;;  %v2218_v21 = vrot.slane %v4504_v19, %v6139_v55 }
 0x255   : > { %v2219_v22 = vcombine.low %v2194_v16, %v2202_v17 }
 0x256   : > { %v2176_v25 = vrot.slane %v2169_v15, %v6144_v2 }
 0x257   : > { %v2226_v27 = vrot.slane %v2219_v22, %v6144_v2 }
 0x258   : > { %4692 = vmatmul.mubr.bf16.vlgmr.msra.gmra.mrb[4].mxu0 %v6176_v0  ;;  %v2005_v0 = vcombine.high %v1533_v26, %v5528_v10 }
 0x259   : > { %4696 = vmatpush3.bf16.xpose.msra.mxu0 %v2243_v20  ;;  %4697 = vmatprep.mubr.msk.bf16.mxu0 %vm5529_vm0, %v5528_v10  ;;  %v2210_v20 = vrot.slane %v2203_v18, %v6139_v55 }
 0x25a   : > { %v2019_v35 = vrot.slane %v2005_v0, %v6139_v55 }
 0x25b   : > { %v2227_v24 = vcombine.low %v2210_v20, %v2218_v21 }
 0x260   : > { %4698 = vmatmul.mubr.bf16.vlgmr.msra.gmra.mrb[8].mxu0 %v6178_v1  ;;  %v2020_v1 = vcombine.high %v1535_v28, %v5528_v10  ;;  %v2234_v28 = vrot.slane %v2227_v24, %v6144_v2 }
 0x262   : > { %v2034_v37 = vrot.slane %v2020_v1, %v6139_v55  ;;  %v2235_v30 = vcombine.low %v2226_v27, %v2234_v28  ;;  %v2236_v31 = vcombine.high %v2226_v27, %v2234_v28 }
 0x264   : > { %v2051_v47 = vcombine.low %v2019_v35, %v2034_v37  ;;  %v2052_v43 = vcombine.high %v2019_v35, %v2034_v37  ;;  %v2239_v35 = vmul.f32 -1e+09, %v2238_v34 }
 0x266   : > { %v2059_v54 = vrot.slane %v2051_v47, %v6144_v2  ;;  %v2066_v56 = vrot.slane %v2052_v43, %v6144_v2  ;;  %v2334_v49 = vrot.slane %v2239_v35, %v6126_v48 }
 0x268   : > { %v2153_v6 = vcombine.low %v2059_v54, %v2066_v56  ;;  %v4502_v7 = vcombine.high %v2059_v54, %v2066_v56 }
 0x26a   : > { %v2160_v13 = vrot.slane %v2153_v6, %v6139_v55  ;;  %v2168_v14 = vrot.slane %v4502_v7, %v6139_v55 }
 0x26c   : > { %v2177_v23 = vcombine.low %v2160_v13, %v2168_v14 }
 0x26e   : > { %v2184_v26 = vrot.slane %v2177_v23, %v6144_v2 }
 0x270   : > { %v2185_v29 = vcombine.low %v2176_v25, %v2184_v26  ;;  %v2186_v0 = vcombine.high %v2176_v25, %v2184_v26 }
 0x272   : > { %v2387_v32 = vpack.c.bf16 %v2235_v30, %v2185_v29  ;;  %v6261_v1 = vpack.c.bf16 %v2236_v31, %v2186_v0  ;;  %v5000_v31 = vld [vmem:[%s5961_s20 + $0x4] ss:$8 sps:$4 sm:$0xff]  }
 0x274   : > { %4702 = vmatpush3.bf16.msra.mxu1 %v2387_v32 }
 0x275   : > { %4707 = vmatprep.subr.bf16.mxu1 %v5528_v10 }
 0x32b   : > { %v2278_v36 = vpop.f32.mrb[4].mxu0 }
 0x32c   : > { %v2326_v37 = vmul.f32 0.088388346, %v2278_v36  ;;  %v4693_v38 = vpop.f32.mrb[5].mxu0 }
 0x32d   : > { %v2281_v39 = vpop.f32.mrb[6].mxu0  ;;  %v5001_v38 = vld [vmem:[%s5961_s20 + $0x10] ss:$8 sps:$4 sm:$0xff]  }
 0x32e   : > { %v2327_v40 = vmul.f32 0.088388346, %v2281_v39  ;;  %v4694_v41 = vpop.f32.mrb[7].mxu0  ;;  %v2336_v42 = vadd.f32 %v2334_v49, %v2326_v37  ;;  %v5003_v37 = vld [vmem:[%s5961_s20 + $0x14] ss:$8 sps:$4 sm:$0xff]  }
 0x32f   : > { %v5004_v39 = vld [vmem:[%s5961_s20 + $0x20] ss:$8 sps:$4 sm:$0xff]   ;;  %v5007_v41 = vld [vmem:[%s5961_s20 + $0x30] ss:$8 sps:$4 sm:$0xff]  }
 0x330   : > { %v2341_v44 = vsel %vm2340_vm1, %v2336_v42, -inf  ;;  %v2337_v46 = vadd.f32 %v2334_v49, %v2327_v40  ;;  %v5009_v40 = vld [vmem:[%s5961_s20 + $0x34] ss:$8 sps:$4 sm:$0xff]  }
 0x331   : > { %2342 = vmax.xlane.f32.xlu0 %v2341_v44  ;;  %v5010_v44 = vld [vmem:[%s5961_s20 + $0x40] ss:$8 sps:$4 sm:$0xff]  }
 0x332   : > { %v2344_v52 = vsel %vm2340_vm1, %v2337_v46, -inf }
 0x333   : > { %v2319_v47 = vpop.f32.mrb[8].mxu0 }
 0x334   : > { %v2328_v43 = vmul.f32 0.088388346, %v2319_v47  ;;  %v4699_v51 = vpop.f32.mrb[9].mxu0  ;;  %v5013_v47 = vld [vmem:[%s5961_s20 + $0x50] ss:$8 sps:$4 sm:$0xff]  }
 0x335   : > { %2345 = vmax.xlane.f32.xlu0 %v2344_v52  ;;  %v2322_v53 = vpop.f32.mrb[10].mxu0  ;;  %v5016_v51 = vld [vmem:[%s5961_s20 + $0x60] ss:$8 sps:$4 sm:$0xff]   ;;  %v5021_v52 = vld [vmem:[%s5961_s20 + $0x74] ss:$8 sps:$4 sm:$0xff]  }
 0x336   : > { %v2329_v54 = vmul.f32 0.088388346, %v2322_v53  ;;  %v4700_v56 = vpop.f32.mrb[11].mxu0  ;;  %v2338_v57 = vadd.f32 %v2334_v49, %v2328_v43  ;;  %v5018_v43 = vld [vmem:[%s5961_s20 + $0x64] ss:$8 sps:$4 sm:$0xff]  }
 0x337   : > { %v5019_v53 = vld [vmem:[%s5961_s20 + $0x70] ss:$8 sps:$4 sm:$0xff]   ;;  %v5022_v56 = vld [vmem:[%s5961_s20 + $0x80] ss:$8 sps:$4 sm:$0xff]  }
 0x338   : > { %v2347_v58 = vsel %vm2340_vm1, %v2338_v57, -inf  ;;  %v2339_v59 = vadd.f32 %v2334_v49, %v2329_v54  ;;  %v4998_v49 = vld [vmem:[%s5961_s20] ss:$8 sps:$4 sm:$0xff]   ;;  %v5024_v54 = vld [vmem:[%s5961_s20 + $0x84] ss:$8 sps:$4 sm:$0xff]  }
 0x339   : > { %2348 = vmax.xlane.f32.xlu1 %v2347_v58  ;;  %v5025_v58 = vld [vmem:[%s5961_s20 + $0x90] ss:$8 sps:$4 sm:$0xff]  }
 0x33a   : > { %v2350_v60 = vsel %vm2340_vm1, %v2339_v59, -inf }
 0x33d   : > { %2351 = vmax.xlane.f32.xlu1 %v2350_v60  ;;  %v5028_v60 = vld [vmem:[%s5961_s20 + $0xa0] ss:$8 sps:$4 sm:$0xff]  }
 0x3be   : > { %v2343_v61 = vpop.xlane.xlu0 %2342 }
 0x3bf   : > { %v2353_v62 = vsub.f32 %v2336_v42, %v2343_v61  ;;  %v5012_v42 = vld [vmem:[%s5961_s20 + $0x44] ss:$8 sps:$4 sm:$0xff]   ;;  %v5033_v61 = vld [vmem:[%s5961_s20 + $0xb4] ss:$8 sps:$4 sm:$0xff]  }
 0x3c1   : > { %v2357_v63 = vmul.f32 1.442695, %v2353_v62  ;;  %v5031_v62 = vld [vmem:[%s5961_s20 + $0xb0] ss:$8 sps:$4 sm:$0xff]  }
 0x3c2   : > { %v2346_v5 = vpop.xlane.xlu0 %2345 }
 0x3c3   : > { %5238 = vpow2.f32 %v2357_v63  ;;  %v2354_v6 = vsub.f32 %v2337_v46, %v2346_v5  ;;  %v5015_v46 = vld [vmem:[%s5961_s20 + $0x54] ss:$8 sps:$4 sm:$0xff]   ;;  %v5036_v63 = vld [vmem:[%s5961_s20 + $0xc4] ss:$8 sps:$4 sm:$0xff]   ;;  %v5034_v5 = vld [vmem:[%s5961_s20 + $0xc0] ss:$8 sps:$4 sm:$0xff]  }
 0x3c5   : > { %v2359_v7 = vmul.f32 1.442695, %v2354_v6  ;;  %v5039_v6 = vld [vmem:[%s5961_s20 + $0xd4] ss:$8 sps:$4 sm:$0xff]  }
 0x3c6   : > { %v2349_v8 = vpop.xlane.xlu1 %2348 }
 0x3c7   : > { %5240 = vpow2.f32 %v2359_v7  ;;  %v2355_v9 = vsub.f32 %v2338_v57, %v2349_v8  ;;  %v5027_v57 = vld [vmem:[%s5961_s20 + $0x94] ss:$8 sps:$4 sm:$0xff]   ;;  %v5037_v7 = vld [vmem:[%s5961_s20 + $0xd0] ss:$8 sps:$4 sm:$0xff]   ;;  %v5040_v8 = vld [vmem:[%s5961_s20 + $0xe0] ss:$8 sps:$4 sm:$0xff]  }
 0x3c9   : > { %v2361_v11 = vmul.f32 1.442695, %v2355_v9  ;;  %v5042_v9 = vld [vmem:[%s5961_s20 + $0xe4] ss:$8 sps:$4 sm:$0xff]  }
 0x3ca   : > { %v2352_v12 = vpop.xlane.xlu1 %2351 }
 0x3cb   : > { %5242 = vpow2.f32 %v2361_v11  ;;  %v2356_v13 = vsub.f32 %v2339_v59, %v2352_v12  ;;  %v5030_v59 = vld [vmem:[%s5961_s20 + $0xa4] ss:$8 sps:$4 sm:$0xff]   ;;  %v5045_v11 = vld [vmem:[%s5961_s20 + $0xf4] ss:$8 sps:$4 sm:$0xff]   ;;  %v5043_v12 = vld [vmem:[%s5961_s20 + $0xf0] ss:$8 sps:$4 sm:$0xff]  }
 0x3cd   : > { %v5239_v14 = vpop.eup %5238  ;;  %v2363_v15 = vmul.f32 1.442695, %v2356_v13 }
 0x3ce   : > { %v2365_v16 = vsel %vm2340_vm1, %v5239_v14, 0.0 }
 0x3cf   : > { %5244 = vpow2.f32 %v2363_v15  ;;  %2366 = vadd.xlane.f32.xlu0 %v2365_v16 }
 0x3d1   : > { %v5241_v17 = vpop.eup %5240 }
 0x3d2   : > { %v2368_v18 = vsel %vm2340_vm1, %v5241_v17, 0.0 }
 0x3d3   : > { %2369 = vadd.xlane.f32.xlu1 %v2368_v18 }
 0x3d5   : > { %v5243_v19 = vpop.eup %5242 }
 0x3d6   : > { %v2371_v20 = vsel %vm2340_vm1, %v5243_v19, 0.0 }
 0x3d7   : > { %2372 = vadd.xlane.f32.xlu0 %v2371_v20 }
 0x3d9   : > { %v5245_v21 = vpop.eup %5244 }
 0x3da   : > { %v2374_v22 = vsel %vm2340_vm1, %v5245_v21, 0.0 }
 0x3db   : > { %2375 = vadd.xlane.f32.xlu1 %v2374_v22 }
 0x45c   : > { %v2367_v23 = vpop.xlane.xlu0 %2366 }
 0x45d   : > { %5246 = vrcp.f32 %v2367_v23 }
 0x460   : > { %v2370_v24 = vpop.xlane.xlu1 %2369 }
 0x461   : > { %5248 = vrcp.f32 %v2370_v24 }
 0x464   : > { %v2373_v25 = vpop.xlane.xlu0 %2372 }
 0x465   : > { %5250 = vrcp.f32 %v2373_v25 }
 0x467   : > { %v5247_v27 = vpop.eup %5246 }
 0x468   : > { %v2376_v26 = vpop.xlane.xlu1 %2375  ;;  %v2381_v29 = vmul.f32 %v5247_v27, %v5239_v14 }
 0x469   : > { %5252 = vrcp.f32 %v2376_v26 }
 0x46b   : > { %v5249_v28 = vpop.eup %5248 }
 0x46c   : > { %v2382_v0 = vmul.f32 %v5249_v28, %v5241_v17 }
 0x46e   : > { %v2385_v30 = vpack.c.bf16 %v2382_v0, %v2381_v29 }
 0x46f   : > { %v5251_v32 = vpop.eup %5250 }
 0x470   : > { %4704 = vmatmul.mubr.msk.bf16.vlgmr.msra.gmra.mrb[8].mxu1 %vm2340_vm1, %v2385_v30  ;;  %v2383_v34 = vmul.f32 %v5251_v32, %v5243_v19 }
 0x471   : > { %4708 = vmatpush3.bf16.msra.mxu1 %v6261_v1  ;;  %4709 = vmatprep.mubr.msk.bf16.mxu1 %vm5529_vm0, %v5528_v10  ;;  %v5006_v1 = vld [vmem:[%s5961_s20 + $0x24] ss:$8 sps:$4 sm:$0xff]  }
 0x472   : > { %2915 = vmatprep.subr.bf16.mxu1 %v5000_v31 }
 0x473   : > { %v5253_v33 = vpop.eup %5252 }
 0x474   : > { %v2384_v35 = vmul.f32 %v5253_v33, %v5245_v21 }
 0x476   : > { %v2386_v36 = vpack.c.bf16 %v2384_v35, %v2383_v34 }
 0x478   : > { %4710 = vmatmul.mubr.msk.bf16.vlgmr.msra.gmra.mrb[12].mxu1 %vm2340_vm1, %v2386_v36 }
 0x479   : > { %2916 = vmatpush1.bf16.msra.mxu1 %v4998_v49 }
 0x47a   : > { %2917 = vmatprep.subr.bf16.mxu1 %v5003_v37 }
 0x47d   : > { %2918 = vmatpush1.bf16.msra.mxu1 %v5001_v38 }
 0x47e   : > { %2919 = vmatprep.subr.bf16.mxu1 %v5006_v1 }
 0x481   : > { %2920 = vmatpush1.bf16.msra.mxu1 %v5004_v39 }
 0x482   : > { %2921 = vmatprep.subr.bf16.mxu1 %v5009_v40 }
 0x485   : > { %2922 = vmatpush1.bf16.msra.mxu1 %v5007_v41 }
 0x486   : > { %2923 = vmatprep.subr.bf16.mxu1 %v5012_v42 }
 0x489   : > { %2924 = vmatpush1.bf16.msra.mxu1 %v5010_v44 }
 0x48a   : > { %2925 = vmatprep.subr.bf16.mxu1 %v5015_v46 }
 0x48d   : > { %2926 = vmatpush1.bf16.msra.mxu1 %v5013_v47 }
 0x48e   : > { %2927 = vmatprep.subr.bf16.mxu1 %v5018_v43 }
 0x491   : > { %2928 = vmatpush1.bf16.msra.mxu1 %v5016_v51 }
 0x492   : > { %2929 = vmatprep.subr.bf16.mxu1 %v5021_v52 }
 0x495   : > { %2930 = vmatpush1.bf16.msra.mxu1 %v5019_v53 }
 0x496   : > { %2931 = vmatprep.subr.bf16.mxu1 %v5024_v54 }
 0x499   : > { %2932 = vmatpush1.bf16.msra.mxu1 %v5022_v56 }
 0x49a   : > { %2933 = vmatprep.subr.bf16.mxu1 %v5027_v57 }
 0x49d   : > { %2934 = vmatpush1.bf16.msra.mxu1 %v5025_v58 }
 0x49e   : > { %2935 = vmatprep.subr.bf16.mxu1 %v5030_v59 }
 0x4a1   : > { %2936 = vmatpush1.bf16.msra.mxu1 %v5028_v60 }
 0x4a2   : > { %2937 = vmatprep.subr.bf16.mxu1 %v5033_v61 }
 0x4a5   : > { %2938 = vmatpush1.bf16.msra.mxu1 %v5031_v62 }
 0x4a6   : > { %2939 = vmatprep.subr.bf16.mxu1 %v5036_v63 }
 0x4a9   : > { %2940 = vmatpush1.bf16.msra.mxu1 %v5034_v5 }
 0x4aa   : > { %2941 = vmatprep.subr.bf16.mxu1 %v5039_v6 }
 0x4ad   : > { %2942 = vmatpush1.bf16.msra.mxu1 %v5037_v7 }
 0x4ae   : > { %2943 = vmatprep.subr.bf16.mxu1 %v5042_v9 }
 0x4b1   : > { %2944 = vmatpush1.bf16.msra.mxu1 %v5040_v8 }
 0x4b2   : > { %2945 = vmatprep.subr.bf16.mxu1 %v5045_v11 }
 0x4b5   : > { %2946 = vmatpush1.bf16.msra.mxu1 %v5043_v12 }
 0x543   : > { %v2426_v13 = vpop.f32.mrb[8].mxu1 }
 0x544   : > { %v4705_v14 = vpop.f32.mrb[9].mxu1  ;;  %v2477_v17 = vcombine.high %v2426_v13, %v5528_v10  ;;  %v2484_v19 = vrot.slane %v2426_v13, %v6139_v55 }
 0x545   : > { %v2429_v15 = vpop.f32.mrb[10].mxu1 }
 0x546   : > { %v4706_v16 = vpop.f32.mrb[11].mxu1  ;;  %v2491_v23 = vrot.slane %v2477_v17, %v6139_v55  ;;  %v2543_v24 = vcombine.high %v2429_v15, %v5528_v10  ;;  %v2550_v30 = vrot.slane %v2429_v15, %v6139_v55 }
 0x548   : > { %v2557_v49 = vrot.slane %v2543_v24, %v6139_v55 }
 0x54b   : > { %v2470_v18 = vpop.f32.mrb[12].mxu1 }
 0x54c   : > { %v2492_v20 = vcombine.high %v2470_v18, %v5528_v10  ;;  %v2499_v21 = vrot.slane %v2470_v18, %v6139_v55  ;;  %v4711_v22 = vpop.f32.mrb[13].mxu1 }
 0x54d   : > { %v2473_v25 = vpop.f32.mrb[14].mxu1 }
 0x54e   : > { %v2506_v26 = vrot.slane %v2492_v20, %v6139_v55  ;;  %v2507_v27 = vcombine.low %v2484_v19, %v2499_v21  ;;  %v2508_v28 = vcombine.high %v2484_v19, %v2499_v21  ;;  %v2558_v29 = vcombine.high %v2473_v25, %v5528_v10  ;;  %v4712_v0 = vpop.f32.mrb[15].mxu1 }
 0x54f   : > { %v2565_v31 = vrot.slane %v2473_v25, %v6139_v55 }
 0x550   : > { %v2515_v32 = vrot.slane %v2507_v27, %v6144_v2  ;;  %v2522_v33 = vrot.slane %v2508_v28, %v6144_v2  ;;  %v2523_v34 = vcombine.low %v2491_v23, %v2506_v26  ;;  %v2524_v35 = vcombine.high %v2491_v23, %v2506_v26  ;;  %v5262_v28 = vld [vmem:[%s6001_s17] sm:$0xff] }
 0x551   : > { %v2572_v36 = vrot.slane %v2558_v29, %v6139_v55  ;;  %v2573_v37 = vcombine.low %v2550_v30, %v2565_v31  ;;  %v2574_v38 = vcombine.high %v2550_v30, %v2565_v31  ;;  %v5263_v31 = vld [vmem:[%s6001_s17 + $0x8] sm:$0xff] }
 0x552   : > { %v2531_v1 = vrot.slane %v2523_v34, %v6144_v2  ;;  %v2538_v10 = vrot.slane %v2524_v35, %v6144_v2  ;;  %v2609_v39 = vcombine.low %v2515_v32, %v2522_v33  ;;  %v4507_v40 = vcombine.high %v2515_v32, %v2522_v33  ;;  %v5264_v34 = vld [vmem:[%s6001_s17 + $0x10] sm:$0xff] }
 0x553   : > { %v2581_v41 = vrot.slane %v2573_v37, %v6144_v2  ;;  %v2588_v42 = vrot.slane %v2574_v38, %v6144_v2  ;;  %v2589_v44 = vcombine.low %v2557_v49, %v2572_v36  ;;  %v2590_v46 = vcombine.high %v2557_v49, %v2572_v36  ;;  %v5265_v49 = vld [vmem:[%s6001_s17 + $0x18] sm:$0xff] }
 0x554   : > { %v2616_v47 = vrot.slane %v2609_v39, %v6139_v55  ;;  %v2624_v43 = vrot.slane %v4507_v40, %v6139_v55  ;;  %v2625_v51 = vcombine.low %v2531_v1, %v2538_v10  ;;  %v4508_v52 = vcombine.high %v2531_v1, %v2538_v10  ;;  %v5046_v1 = vld [vmem:[%s5940_s26] ss:$16 sps:$4 sm:$0xff]   ;;  %v5048_v10 = vld [vmem:[%s5940_s26 + $0x4] ss:$16 sps:$4 sm:$0xff]   ;;  %v5049_v39 = vld [vmem:[%s5940_s26 + $0x8] ss:$16 sps:$4 sm:$0xff]  }
 0x555   : > { %v2597_v53 = vrot.slane %v2589_v44, %v6144_v2  ;;  %v2604_v54 = vrot.slane %v2590_v46, %v6144_v2  ;;  %v2659_v56 = vcombine.low %v2581_v41, %v2588_v42  ;;  %v4509_v57 = vcombine.high %v2581_v41, %v2588_v42  ;;  %v5051_v40 = vld [vmem:[%s5940_s26 + $0xc] ss:$16 sps:$4 sm:$0xff]   ;;  %v5054_v41 = vld [vmem:[%s5940_s26 + $0x24] ss:$16 sps:$4 sm:$0xff]   ;;  %3435 = vmatprep.subr.bf16.mxu0 %v5048_v10  ;;  %v5052_v44 = vld [vmem:[%s5940_s26 + $0x20] ss:$16 sps:$4 sm:$0xff]  }
 0x556   : > { %v2632_v58 = vrot.slane %v2625_v51, %v6139_v55  ;;  %v2640_v59 = vrot.slane %v4508_v52, %v6139_v55  ;;  %v2641_v60 = vcombine.low %v2616_v47, %v2624_v43  ;;  %v5057_v42 = vld [vmem:[%s5940_s26 + $0x2c] ss:$16 sps:$4 sm:$0xff]   ;;  %3478 = vmatprep.subr.bf16.mxu1 %v5051_v40  ;;  %3436 = vmatpush1.bf16.msra.mxu0 %v5046_v1  ;;  %v5055_v46 = vld [vmem:[%s5940_s26 + $0x28] ss:$16 sps:$4 sm:$0xff]   ;;  %v5060_v47 = vld [vmem:[%s5940_s26 + $0x44] ss:$16 sps:$4 sm:$0xff]  }
 0x557   : > { %v2666_v61 = vrot.slane %v2659_v56, %v6139_v55  ;;  %v2674_v62 = vrot.slane %v4509_v57, %v6139_v55  ;;  %v2675_v63 = vcombine.low %v2597_v53, %v2604_v54  ;;  %v4510_v5 = vcombine.high %v2597_v53, %v2604_v54  ;;  %3437 = vmatprep.subr.bf16.mxu0 %v5054_v41  ;;  %v5063_v43 = vld [vmem:[%s5940_s26 + $0x4c] ss:$16 sps:$4 sm:$0xff]   ;;  %v5058_v51 = vld [vmem:[%s5940_s26 + $0x40] ss:$16 sps:$4 sm:$0xff]   ;;  %v5061_v52 = vld [vmem:[%s5940_s26 + $0x48] ss:$16 sps:$4 sm:$0xff]  }
 0x558   : > { %v2649_v6 = vcombine.low %v2632_v58, %v2640_v59  ;;  %v2648_v11 = vrot.slane %v2641_v60, %v6144_v2  ;;  %v5066_v53 = vld [vmem:[%s5940_s26 + $0x64] ss:$16 sps:$4 sm:$0xff]   ;;  %v5069_v54 = vld [vmem:[%s5940_s26 + $0x6c] ss:$16 sps:$4 sm:$0xff]   ;;  %v5064_v56 = vld [vmem:[%s5940_s26 + $0x60] ss:$16 sps:$4 sm:$0xff]  }
 0x559   : > { %v2682_v7 = vrot.slane %v2675_v63, %v6139_v55  ;;  %v2690_v8 = vrot.slane %v4510_v5, %v6139_v55  ;;  %v2691_v9 = vcombine.low %v2666_v61, %v2674_v62  ;;  %v2743_v55 = vld [vmem:[%s6769_s28] sm:$0x3]  ;;  %v5067_v57 = vld [vmem:[%s5940_s26 + $0x68] ss:$16 sps:$4 sm:$0xff]   ;;  %v5072_v58 = vld [vmem:[%s5940_s26 + $0x84] ss:$16 sps:$4 sm:$0xff]  }
 0x55a   : > { %v2656_v12 = vrot.slane %v2649_v6, %v6144_v2  ;;  %v2748_v22 = vrot.slane %v2743_v55, %v6126_v48  ;;  %v2752_v23 = vrot.slane %v2743_v55, %v6132_v50  ;;  %3438 = vmatpush1.bf16.msra.mxu0 %v5052_v44  ;;  %v5075_v59 = vld [vmem:[%s5940_s26 + $0x8c] ss:$16 sps:$4 sm:$0xff]   ;;  %v5070_v60 = vld [vmem:[%s5940_s26 + $0x80] ss:$16 sps:$4 sm:$0xff]   ;;  %v5073_v61 = vld [vmem:[%s5940_s26 + $0x88] ss:$16 sps:$4 sm:$0xff]  }
 0x55b   : > { %v2699_v13 = vcombine.low %v2682_v7, %v2690_v8  ;;  %v2698_v16 = vrot.slane %v2691_v9, %v6144_v2  ;;  %3439 = vmatprep.subr.bf16.mxu0 %v5060_v47  ;;  %v5078_v62 = vld [vmem:[%s5940_s26 + $0xa4] ss:$16 sps:$4 sm:$0xff]   ;;  %v5081_v63 = vld [vmem:[%s5940_s26 + $0xac] ss:$16 sps:$4 sm:$0xff]   ;;  %v5076_v5 = vld [vmem:[%s5940_s26 + $0xa0] ss:$16 sps:$4 sm:$0xff]  }
 0x55c   : > { %v2658_v14 = vcombine.high %v2648_v11, %v2656_v12  ;;  %v2657_v15 = vcombine.low %v2648_v11, %v2656_v12  ;;  %v5079_v6 = vld [vmem:[%s5940_s26 + $0xa8] ss:$16 sps:$4 sm:$0xff]   ;;  %v5084_v7 = vld [vmem:[%s5940_s26 + $0xc4] ss:$16 sps:$4 sm:$0xff]   ;;  %v5087_v8 = vld [vmem:[%s5940_s26 + $0xcc] ss:$16 sps:$4 sm:$0xff]  }
 0x55d   : > { %v2706_v17 = vrot.slane %v2699_v13, %v6144_v2  ;;  %v5082_v9 = vld [vmem:[%s5940_s26 + $0xc0] ss:$16 sps:$4 sm:$0xff]   ;;  %v5085_v11 = vld [vmem:[%s5940_s26 + $0xc8] ss:$16 sps:$4 sm:$0xff]   ;;  %v5090_v12 = vld [vmem:[%s5940_s26 + $0xe4] ss:$16 sps:$4 sm:$0xff]  }
 0x55e   : > { %3440 = vmatpush1.bf16.msra.mxu0 %v5058_v51  ;;  %v5093_v13 = vld [vmem:[%s5940_s26 + $0xec] ss:$16 sps:$4 sm:$0xff]   ;;  %v5100_v55 = vld [vmem:[%s5940_s26 + $0x120] ss:$16 sps:$4 sm:$0xff]   ;;  %v5120_v40 = vld [vmem:[%s5940_s26 + $0x184] ss:$16 sps:$4 sm:$0xff]  }
 0x55f   : > { %v2708_v18 = vcombine.high %v2698_v16, %v2706_v17  ;;  %v2707_v19 = vcombine.low %v2698_v16, %v2706_v17  ;;  %3441 = vmatprep.subr.bf16.mxu0 %v5066_v53  ;;  %v5096_v16 = vld [vmem:[%s5940_s26 + $0x104] ss:$16 sps:$4 sm:$0xff]   ;;  %v5099_v17 = vld [vmem:[%s5940_s26 + $0x10c] ss:$16 sps:$4 sm:$0xff]   ;;  %v5112_v10 = vld [vmem:[%s5940_s26 + $0x160] ss:$16 sps:$4 sm:$0xff]  }
 0x560   : > { %v5117_v1 = vld [vmem:[%s5940_s26 + $0x16c] ss:$16 sps:$4 sm:$0xff]   ;;  %v5121_v44 = vld [vmem:[%s5940_s26 + $0x188] ss:$16 sps:$4 sm:$0xff]   ;;  %s5532_s28 = smov [#allocation10]  }
 0x561   : > { %v2710_v20 = vpack.c.bf16 %v2708_v18, %v2658_v14  ;;  %v2709_v21 = vpack.c.bf16 %v2707_v19, %v2657_v15  ;;  %v5088_v14 = vld [vmem:[%s5940_s26 + $0xe0] ss:$16 sps:$4 sm:$0xff]   ;;  %v5091_v15 = vld [vmem:[%s5940_s26 + $0xe8] ss:$16 sps:$4 sm:$0xff]   ;;  %v5123_v41 = vld [vmem:[%s5940_s26 + $0x18c] ss:$16 sps:$4 sm:$0xff]  }
 0x562   : > { %3442 = vmatpush1.bf16.msra.mxu0 %v5064_v56  ;;  %v5094_v18 = vld [vmem:[%s5940_s26 + $0x100] ss:$16 sps:$4 sm:$0xff]   ;;  %v5097_v19 = vld [vmem:[%s5940_s26 + $0x108] ss:$16 sps:$4 sm:$0xff]   ;;  %v5129_v47 = vld [vmem:[%s5940_s26 + $0x1ac] ss:$16 sps:$4 sm:$0xff]  }
 0x563   : > { %2947 = vmatprep.mubr.bf16.mxu1 %v2710_v20  ;;  %3443 = vmatprep.subr.bf16.mxu0 %v5072_v58  ;;  %v5102_v20 = vld [vmem:[%s5940_s26 + $0x124] ss:$16 sps:$4 sm:$0xff]   ;;  %v5127_v51 = vld [vmem:[%s5940_s26 + $0x1a8] ss:$16 sps:$4 sm:$0xff]   ;;  %v5135_v53 = vld [vmem:[%s5940_s26 + $0x1cc] ss:$16 sps:$4 sm:$0xff]  }
 0x564   : > { %2948 = vmatmul.mubr.bf16.vlgmr.msra.gmra.mrb[16].mxu1 %v2709_v21  ;;  %v5105_v21 = vld [vmem:[%s5940_s26 + $0x12c] ss:$16 sps:$4 sm:$0xff]   ;;  %v5133_v56 = vld [vmem:[%s5940_s26 + $0x1c8] ss:$16 sps:$4 sm:$0xff]  }
 0x565   : > { %3479 = vmatpush1.bf16.msra.mxu1 %v5049_v39  ;;  %v5115_v39 = vld [vmem:[%s5940_s26 + $0x168] ss:$16 sps:$4 sm:$0xff]   ;;  %v5141_v58 = vld [vmem:[%s5940_s26 + $0x1ec] ss:$16 sps:$4 sm:$0xff]  }
 0x566   : > { %3480 = vmatprep.subr.bf16.mxu1 %v5057_v42  ;;  %3444 = vmatpush1.bf16.msra.mxu0 %v5070_v60  ;;  %v5118_v42 = vld [vmem:[%s5940_s26 + $0x180] ss:$16 sps:$4 sm:$0xff]   ;;  %v5139_v60 = vld [vmem:[%s5940_s26 + $0x1e8] ss:$16 sps:$4 sm:$0xff]  }
 0x567   : > { %3445 = vmatprep.subr.bf16.mxu0 %v5078_v62 }
 0x569   : > { %3481 = vmatpush1.bf16.msra.mxu1 %v5055_v46  ;;  %v5126_v46 = vld [vmem:[%s5940_s26 + $0x1a4] ss:$16 sps:$4 sm:$0xff]  }
 0x56a   : > { %3482 = vmatprep.subr.bf16.mxu1 %v5063_v43  ;;  %3446 = vmatpush1.bf16.msra.mxu0 %v5076_v5  ;;  %v5124_v43 = vld [vmem:[%s5940_s26 + $0x1a0] ss:$16 sps:$4 sm:$0xff]  }
 0x56b   : > { %3447 = vmatprep.subr.bf16.mxu0 %v5084_v7 }
 0x56d   : > { %3483 = vmatpush1.bf16.msra.mxu1 %v5061_v52  ;;  %v5132_v52 = vld [vmem:[%s5940_s26 + $0x1c4] ss:$16 sps:$4 sm:$0xff]  }
 0x56e   : > { %3484 = vmatprep.subr.bf16.mxu1 %v5069_v54  ;;  %3448 = vmatpush1.bf16.msra.mxu0 %v5082_v9  ;;  %v5130_v54 = vld [vmem:[%s5940_s26 + $0x1c0] ss:$16 sps:$4 sm:$0xff]  }
 0x56f   : > { %3449 = vmatprep.subr.bf16.mxu0 %v5090_v12  ;;  %v2962_v9 = vld [vmem:[%s6772_s25] sm:$0x3] }
 0x570   : > { %v3001_v12 = vrot.slane %v2962_v9, %v6126_v48 }
 0x571   : > { %3485 = vmatpush1.bf16.msra.mxu1 %v5067_v57  ;;  %v5138_v57 = vld [vmem:[%s5940_s26 + $0x1e4] ss:$16 sps:$4 sm:$0xff]  }
 0x572   : > { %3486 = vmatprep.subr.bf16.mxu1 %v5075_v59  ;;  %3450 = vmatpush1.bf16.msra.mxu0 %v5088_v14  ;;  %v5136_v59 = vld [vmem:[%s5940_s26 + $0x1e0] ss:$16 sps:$4 sm:$0xff]  }
 0x573   : > { %3451 = vmatprep.subr.bf16.mxu0 %v5096_v16 }
 0x575   : > { %3487 = vmatpush1.bf16.msra.mxu1 %v5073_v61  ;;  %v5144_v61 = vld [vmem:[%s6770_s6 + $0x4] ss:$8 sps:$4 sm:$0xff]  }
 0x576   : > { %3488 = vmatprep.subr.bf16.mxu1 %v5081_v63  ;;  %3452 = vmatpush1.bf16.msra.mxu0 %v5094_v18 }
 0x577   : > { %3453 = vmatprep.subr.bf16.mxu0 %v5102_v20 }
 0x579   : > { %3489 = vmatpush1.bf16.msra.mxu1 %v5079_v6 }
 0x57a   : > { %3490 = vmatprep.subr.bf16.mxu1 %v5087_v8  ;;  %3454 = vmatpush1.bf16.msra.mxu0 %v5100_v55 }
 0x57d   : > { %3491 = vmatpush1.bf16.msra.mxu1 %v5085_v11  ;;  %v2963_v11 = vld [vmem:[%s768_s3] sm:$0x3] }
 0x57e   : > { %3492 = vmatprep.subr.bf16.mxu1 %v5093_v13  ;;  %v3005_v13 = vrot.slane %v2962_v9, %v6132_v50  ;;  %v3016_v18 = vrot.slane %v2963_v11, %v6126_v48 }
 0x581   : > { %3493 = vmatpush1.bf16.msra.mxu1 %v5091_v15 }
 0x582   : > { %3494 = vmatprep.subr.bf16.mxu1 %v5099_v17 }
 0x585   : > { %3495 = vmatpush1.bf16.msra.mxu1 %v5097_v19  ;;  %v3020_v19 = vrot.slane %v2963_v11, %v6132_v50 }
 0x586   : > { %3496 = vmatprep.subr.bf16.mxu1 %v5105_v21 }
 0x637   : > { %v2949_v24 = vpop.f32.mrb[16].mxu1 }
 0x638   : > { %v2950_v2 = vadd.f32 %v2949_v24, %v2748_v22  ;;  %v2951_v25 = vpop.f32.mrb[17].mxu1 }
 0x639   : > { %v2952_v26 = vadd.f32 %v2951_v25, %v2752_v23  ;;  %v2953_v27 = vpop.f32.mrb[18].mxu1 }
 0x63a   : > { %v6355_v29 = vadd.f32 %v5262_v28, %v2950_v2  ;;  %v2954_v0 = vadd.f32 %v2953_v27, %v2748_v22  ;;  %v2955_v30 = vpop.f32.mrb[19].mxu1  ;;  %v5103_v22 = vld [vmem:[%s5940_s26 + $0x128] ss:$16 sps:$4 sm:$0xff]  }
 0x63b   : > { %v6358_v32 = vadd.f32 %v5263_v31, %v2952_v26  ;;  %v2956_v33 = vadd.f32 %v2955_v30, %v2752_v23  ;;  %3497 = vmatpush1.bf16.msra.mxu1 %v5103_v22 }
 0x63c   : > { %v6361_v35 = vadd.f32 %v5264_v34, %v2954_v0 }
 0x63d   : > { %v6364_v36 = vadd.f32 %v5265_v49, %v2956_v33  ;;  %v2964_v37 = vadd.f32 %v6358_v32, %v6355_v29  ;;  %v5111_v49 = vld [vmem:[%s5940_s26 + $0x14c] ss:$16 sps:$4 sm:$0xff]  }
 0x63e   : > { %3498 = vmatprep.subr.bf16.mxu1 %v5111_v49  ;;  %v5156_v49 = vld [vmem:[%s6770_s6 + $0x44] ss:$8 sps:$4 sm:$0xff]  }
 0x63f   : > { %2965 = vadd.xlane.f32.xlu0 %v2964_v37  ;;  %v2967_v38 = vadd.f32 %v6364_v36, %v6361_v35  ;;  %v5109_v37 = vld [vmem:[%s5940_s26 + $0x148] ss:$16 sps:$4 sm:$0xff]  }
 0x640   : > { %3499 = vmatpush1.bf16.msra.mxu1 %v5109_v37  ;;  %v5159_v37 = vld [vmem:[%s6770_s6 + $0x54] ss:$8 sps:$4 sm:$0xff]  }
 0x641   : > { %2968 = vadd.xlane.f32.xlu1 %v2967_v38  ;;  %v5114_v38 = vld [vmem:[%s5940_s26 + $0x164] ss:$16 sps:$4 sm:$0xff]   ;;  %3500 = vmatprep.subr.bf16.mxu1 %v5117_v1 }
 0x642   : > { %v5162_v1 = vld [vmem:[%s6770_s6 + $0x64] ss:$8 sps:$4 sm:$0xff]  }
 0x644   : > { %3501 = vmatpush1.bf16.msra.mxu1 %v5115_v39  ;;  %v5165_v39 = vld [vmem:[%s6770_s6 + $0x74] ss:$8 sps:$4 sm:$0xff]  }
 0x645   : > { %3502 = vmatprep.subr.bf16.mxu1 %v5123_v41  ;;  %v5168_v41 = vld [vmem:[%s6770_s6 + $0x84] ss:$8 sps:$4 sm:$0xff]  }
 0x648   : > { %3503 = vmatpush1.bf16.msra.mxu1 %v5121_v44  ;;  %v5171_v44 = vld [vmem:[%s6770_s6 + $0x94] ss:$8 sps:$4 sm:$0xff]  }
 0x649   : > { %3504 = vmatprep.subr.bf16.mxu1 %v5129_v47  ;;  %v5174_v47 = vld [vmem:[%s6770_s6 + $0xa4] ss:$8 sps:$4 sm:$0xff]  }
 0x64c   : > { %3505 = vmatpush1.bf16.msra.mxu1 %v5127_v51  ;;  %v5177_v51 = vld [vmem:[%s6770_s6 + $0xb4] ss:$8 sps:$4 sm:$0xff]  }
 0x64d   : > { %3506 = vmatprep.subr.bf16.mxu1 %v5135_v53  ;;  %v5180_v53 = vld [vmem:[%s6770_s6 + $0xc4] ss:$8 sps:$4 sm:$0xff]  }
 0x650   : > { %3507 = vmatpush1.bf16.msra.mxu1 %v5133_v56  ;;  %v5183_v56 = vld [vmem:[%s6770_s6 + $0xd4] ss:$8 sps:$4 sm:$0xff]  }
 0x651   : > { %3508 = vmatprep.subr.bf16.mxu1 %v5141_v58  ;;  %v5186_v58 = vld [vmem:[%s6770_s6 + $0xe4] ss:$8 sps:$4 sm:$0xff]  }
 0x654   : > { %3509 = vmatpush1.bf16.msra.mxu1 %v5139_v60  ;;  %v5189_v60 = vld [vmem:[%s6770_s6 + $0xf4] ss:$8 sps:$4 sm:$0xff]  }
 0x6cc   : > { %v2966_v23 = vpop.xlane.xlu0 %2965 }
 0x6cd   : > { %v2971_v24 = vmul.f32 0.00390625, %v2966_v23 }
 0x6ce   : > { %v2969_v2 = vpop.xlane.xlu1 %2968 }
 0x6cf   : > { %v6411_v25 = vsub.f32 %v6355_v29, %v2971_v24  ;;  %v6414_v26 = vsub.f32 %v6358_v32, %v2971_v24  ;;  %v2972_v27 = vmul.f32 0.00390625, %v2969_v2 }
 0x6d1   : > { %v6417_v28 = vsub.f32 %v6361_v35, %v2972_v27  ;;  %v6420_v0 = vsub.f32 %v6364_v36, %v2972_v27  ;;  %v2977_v30 = vmul.f32 %v6411_v25, %v6411_v25  ;;  %v2978_v31 = vmul.f32 %v6414_v26, %v6414_v26  ;;  %v5108_v35 = vld [vmem:[%s5940_s26 + $0x144] ss:$16 sps:$4 sm:$0xff]   ;;  %v5106_v36 = vld [vmem:[%s5940_s26 + $0x140] ss:$16 sps:$4 sm:$0xff]  }
 0x6d2   : > { %3455 = vmatprep.subr.bf16.mxu0 %v5108_v35  ;;  %v5151_v35 = vld [vmem:[%s6770_s6 + $0x30] ss:$8 sps:$4 sm:$0xff]  }
 0x6d3   : > { %v2981_v29 = vadd.f32 %v2978_v31, %v2977_v30  ;;  %v2979_v32 = vmul.f32 %v6417_v28, %v6417_v28  ;;  %v2980_v33 = vmul.f32 %v6420_v0, %v6420_v0  ;;  %3456 = vmatpush1.bf16.msra.mxu0 %v5106_v36  ;;  %v5142_v30 = vld [vmem:[%s6770_s6] ss:$8 sps:$4 sm:$0xff]   ;;  %v5147_v31 = vld [vmem:[%s6770_s6 + $0x14] ss:$8 sps:$4 sm:$0xff]  }
 0x6d4   : > { %3457 = vmatprep.subr.bf16.mxu0 %v5114_v38  ;;  %v5154_v36 = vld [vmem:[%s6770_s6 + $0x40] ss:$8 sps:$4 sm:$0xff]   ;;  %v5157_v38 = vld [vmem:[%s6770_s6 + $0x50] ss:$8 sps:$4 sm:$0xff]  }
 0x6d5   : > { %2982 = vadd.xlane.f32.xlu0 %v2981_v29  ;;  %v2984_v34 = vadd.f32 %v2980_v33, %v2979_v32  ;;  %v5145_v29 = vld [vmem:[%s6770_s6 + $0x10] ss:$8 sps:$4 sm:$0xff]   ;;  %v5150_v32 = vld [vmem:[%s6770_s6 + $0x24] ss:$8 sps:$4 sm:$0xff]   ;;  %v5148_v33 = vld [vmem:[%s6770_s6 + $0x20] ss:$8 sps:$4 sm:$0xff]  }
 0x6d7   : > { %2985 = vadd.xlane.f32.xlu1 %v2984_v34  ;;  %3458 = vmatpush1.bf16.msra.mxu0 %v5112_v10  ;;  %v5153_v34 = vld [vmem:[%s6770_s6 + $0x34] ss:$8 sps:$4 sm:$0xff]   ;;  %v5160_v10 = vld [vmem:[%s6770_s6 + $0x60] ss:$8 sps:$4 sm:$0xff]  }
 0x6d8   : > { %3459 = vmatprep.subr.bf16.mxu0 %v5120_v40  ;;  %v5163_v40 = vld [vmem:[%s6770_s6 + $0x70] ss:$8 sps:$4 sm:$0xff]  }
 0x6db   : > { %3460 = vmatpush1.bf16.msra.mxu0 %v5118_v42  ;;  %v5166_v42 = vld [vmem:[%s6770_s6 + $0x80] ss:$8 sps:$4 sm:$0xff]  }
 0x6dc   : > { %3461 = vmatprep.subr.bf16.mxu0 %v5126_v46  ;;  %v5169_v46 = vld [vmem:[%s6770_s6 + $0x90] ss:$8 sps:$4 sm:$0xff]  }
 0x6df   : > { %3462 = vmatpush1.bf16.msra.mxu0 %v5124_v43  ;;  %v5172_v43 = vld [vmem:[%s6770_s6 + $0xa0] ss:$8 sps:$4 sm:$0xff]  }
 0x6e0   : > { %3463 = vmatprep.subr.bf16.mxu0 %v5132_v52  ;;  %v5175_v52 = vld [vmem:[%s6770_s6 + $0xb0] ss:$8 sps:$4 sm:$0xff]  }
 0x6e3   : > { %3464 = vmatpush1.bf16.msra.mxu0 %v5130_v54  ;;  %v5178_v54 = vld [vmem:[%s6770_s6 + $0xc0] ss:$8 sps:$4 sm:$0xff]  }
 0x6e4   : > { %3465 = vmatprep.subr.bf16.mxu0 %v5138_v57  ;;  %v5181_v57 = vld [vmem:[%s6770_s6 + $0xd0] ss:$8 sps:$4 sm:$0xff]  }
 0x6e7   : > { %3466 = vmatpush1.bf16.msra.mxu0 %v5136_v59  ;;  %v5184_v59 = vld [vmem:[%s6770_s6 + $0xe0] ss:$8 sps:$4 sm:$0xff]  }
 0x6e8   : > { %3929 = vmatprep.subr.bf16.mxu0 %v5144_v61  ;;  %v5187_v61 = vld [vmem:[%s6770_s6 + $0xf0] ss:$8 sps:$4 sm:$0xff]  }
 0x762   : > { %v2983_v62 = vpop.xlane.xlu0 %2982 }
 0x763   : > { %v2987_v63 = vmul.f32 0.00390625, %v2983_v62  ;;  %v5192_v62 = vld [vmem:[%s6770_s6 + $0x104] ss:$8 sps:$4 sm:$0xff]  }
 0x764   : > { %v2986_v5 = vpop.xlane.xlu1 %2985 }
 0x765   : > { %v2989_v6 = vadd.f32 1e-05, %v2987_v63  ;;  %v2988_v7 = vmul.f32 0.00390625, %v2986_v5  ;;  %v3093_v63 = vld [vmem:[%s5989_s2] sm:$0xf] }
 0x766   : > { %v3098_v5 = vrot.slane %v3093_v63, %v6126_v48 }
 0x767   : > { %5254 = vrsqrt.f32 %v2989_v6  ;;  %v2990_v8 = vadd.f32 1e-05, %v2988_v7  ;;  %v3106_v6 = vrot.slane %v3093_v63, %v912_v3  ;;  %v3102_v7 = vrot.slane %v3093_v63, %v6132_v50 }
 0x769   : > { %5256 = vrsqrt.f32 %v2990_v8  ;;  %v3110_v8 = vrot.slane %v3093_v63, %v916_v4  ;;  %v5231_v63 = vld [vmem:[%s6770_s6 + $0x1d4] ss:$8 sps:$4 sm:$0xff]  }
 0x771   : > { %v5255_v14 = vpop.eup %5254 }
 0x772   : > { %v2993_v15 = vmul.f32 %v5255_v14, %v6411_v25  ;;  %v2994_v16 = vmul.f32 %v5255_v14, %v6414_v26 }
 0x773   : > { %v5257_v17 = vpop.eup %5256 }
 0x774   : > { %v2995_v20 = vmul.f32 %v5257_v17, %v6417_v28  ;;  %v2996_v21 = vmul.f32 %v5257_v17, %v6420_v0  ;;  %v3009_v55 = vmul.f32 %v3005_v13, %v2994_v16  ;;  %v3008_v22 = vmul.f32 %v3001_v12, %v2993_v15 }
 0x776   : > { %v3011_v23 = vmul.f32 %v3005_v13, %v2996_v21  ;;  %v3010_v24 = vmul.f32 %v3001_v12, %v2995_v20  ;;  %v6473_v2 = vadd.f32 %v3020_v19, %v3009_v55  ;;  %v6477_v26 = vadd.f32 %v3016_v18, %v3008_v22 }
 0x778   : > { %v6475_v25 = vadd.f32 %v3020_v19, %v3011_v23  ;;  %v6479_v27 = vadd.f32 %v3016_v18, %v3010_v24 }
 0x77a   : > { %v3028_v28 = vpack.c.bf16 %v6475_v25, %v6473_v2  ;;  %v3027_v0 = vpack.c.bf16 %v6479_v27, %v6477_v26 }
 0x77c   : > { %3467 = vmatprep.mubr.bf16.mxu0 %v3028_v28  ;;  %3510 = vmatprep.mubr.bf16.mxu1 %v3028_v28 }
 0x77d   : > { %3468 = vmatmul.mubr.bf16.vlgmr.msra.gmra.mrb[12].mxu0 %v3027_v0  ;;  %3511 = vmatmul.mubr.bf16.vlgmr.msra.gmra.mrb[20].mxu1 %v3027_v0 }
 0x77e   : > { %3930 = vmatpush1.bf16.msra.mxu0 %v5142_v30 }
 0x77f   : > { %3931 = vmatprep.subr.bf16.mxu0 %v5147_v31 }
 0x782   : > { %3932 = vmatpush1.bf16.msra.mxu0 %v5145_v29 }
 0x783   : > { %3933 = vmatprep.subr.bf16.mxu0 %v5150_v32 }
 0x786   : > { %3934 = vmatpush1.bf16.msra.mxu0 %v5148_v33 }
 0x787   : > { %3935 = vmatprep.subr.bf16.mxu0 %v5153_v34 }
 0x78a   : > { %3936 = vmatpush1.bf16.msra.mxu0 %v5151_v35 }
 0x78b   : > { %3937 = vmatprep.subr.bf16.mxu0 %v5156_v49  ;;  %v5190_v49 = vld [vmem:[%s6770_s6 + $0x100] ss:$8 sps:$4 sm:$0xff]  }
 0x78e   : > { %3938 = vmatpush1.bf16.msra.mxu0 %v5154_v36  ;;  %v5195_v36 = vld [vmem:[%s6770_s6 + $0x114] ss:$8 sps:$4 sm:$0xff]  }
 0x78f   : > { %3939 = vmatprep.subr.bf16.mxu0 %v5159_v37  ;;  %v5193_v37 = vld [vmem:[%s6770_s6 + $0x110] ss:$8 sps:$4 sm:$0xff]  }
 0x792   : > { %3940 = vmatpush1.bf16.msra.mxu0 %v5157_v38  ;;  %v5198_v38 = vld [vmem:[%s6770_s6 + $0x124] ss:$8 sps:$4 sm:$0xff]  }
 0x793   : > { %3941 = vmatprep.subr.bf16.mxu0 %v5162_v1  ;;  %v5196_v1 = vld [vmem:[%s6770_s6 + $0x120] ss:$8 sps:$4 sm:$0xff]  }
 0x796   : > { %3942 = vmatpush1.bf16.msra.mxu0 %v5160_v10  ;;  %v5201_v10 = vld [vmem:[%s6770_s6 + $0x134] ss:$8 sps:$4 sm:$0xff]  }
 0x797   : > { %3943 = vmatprep.subr.bf16.mxu0 %v5165_v39  ;;  %v5199_v39 = vld [vmem:[%s6770_s6 + $0x130] ss:$8 sps:$4 sm:$0xff]  }
 0x79a   : > { %3944 = vmatpush1.bf16.msra.mxu0 %v5163_v40  ;;  %v5204_v40 = vld [vmem:[%s6770_s6 + $0x144] ss:$8 sps:$4 sm:$0xff]  }
 0x79b   : > { %3945 = vmatprep.subr.bf16.mxu0 %v5168_v41  ;;  %v5202_v41 = vld [vmem:[%s6770_s6 + $0x140] ss:$8 sps:$4 sm:$0xff]  }
 0x79e   : > { %3946 = vmatpush1.bf16.msra.mxu0 %v5166_v42  ;;  %v5207_v42 = vld [vmem:[%s6770_s6 + $0x154] ss:$8 sps:$4 sm:$0xff]  }
 0x79f   : > { %3947 = vmatprep.subr.bf16.mxu0 %v5171_v44  ;;  %v5205_v44 = vld [vmem:[%s6770_s6 + $0x150] ss:$8 sps:$4 sm:$0xff]  }
 0x7a2   : > { %3948 = vmatpush1.bf16.msra.mxu0 %v5169_v46  ;;  %v5210_v46 = vld [vmem:[%s6770_s6 + $0x164] ss:$8 sps:$4 sm:$0xff]  }
 0x7a3   : > { %3949 = vmatprep.subr.bf16.mxu0 %v5174_v47  ;;  %v5208_v47 = vld [vmem:[%s6770_s6 + $0x160] ss:$8 sps:$4 sm:$0xff]  }
 0x7a6   : > { %3950 = vmatpush1.bf16.msra.mxu0 %v5172_v43  ;;  %v5213_v43 = vld [vmem:[%s6770_s6 + $0x174] ss:$8 sps:$4 sm:$0xff]  }
 0x7a7   : > { %3951 = vmatprep.subr.bf16.mxu0 %v5177_v51  ;;  %v5211_v51 = vld [vmem:[%s6770_s6 + $0x170] ss:$8 sps:$4 sm:$0xff]  }
 0x7aa   : > { %3952 = vmatpush1.bf16.msra.mxu0 %v5175_v52  ;;  %v5216_v52 = vld [vmem:[%s6770_s6 + $0x184] ss:$8 sps:$4 sm:$0xff]  }
 0x7ab   : > { %3953 = vmatprep.subr.bf16.mxu0 %v5180_v53  ;;  %v5214_v53 = vld [vmem:[%s6770_s6 + $0x180] ss:$8 sps:$4 sm:$0xff]  }
 0x7ae   : > { %3954 = vmatpush1.bf16.msra.mxu0 %v5178_v54  ;;  %v5219_v54 = vld [vmem:[%s6770_s6 + $0x194] ss:$8 sps:$4 sm:$0xff]  }
 0x7af   : > { %3955 = vmatprep.subr.bf16.mxu0 %v5183_v56  ;;  %v5217_v56 = vld [vmem:[%s6770_s6 + $0x190] ss:$8 sps:$4 sm:$0xff]  }
 0x7b2   : > { %3956 = vmatpush1.bf16.msra.mxu0 %v5181_v57  ;;  %v5222_v57 = vld [vmem:[%s6770_s6 + $0x1a4] ss:$8 sps:$4 sm:$0xff]  }
 0x7b3   : > { %3957 = vmatprep.subr.bf16.mxu0 %v5186_v58  ;;  %v5220_v58 = vld [vmem:[%s6770_s6 + $0x1a0] ss:$8 sps:$4 sm:$0xff]  }
 0x7b6   : > { %3958 = vmatpush1.bf16.msra.mxu0 %v5184_v59  ;;  %v5225_v59 = vld [vmem:[%s6770_s6 + $0x1b4] ss:$8 sps:$4 sm:$0xff]  }
 0x7b7   : > { %3959 = vmatprep.subr.bf16.mxu0 %v5189_v60  ;;  %v5223_v60 = vld [vmem:[%s6770_s6 + $0x1b0] ss:$8 sps:$4 sm:$0xff]  }
 0x7ba   : > { %3960 = vmatpush1.bf16.msra.mxu0 %v5187_v61  ;;  %v5228_v61 = vld [vmem:[%s6770_s6 + $0x1c4] ss:$8 sps:$4 sm:$0xff]  }
 0x7bb   : > { %3972 = vmatprep.subr.bf16.mxu0 %v5192_v62  ;;  %v5226_v62 = vld [vmem:[%s6770_s6 + $0x1c0] ss:$8 sps:$4 sm:$0xff]  }
 0x850   : > { %v3469_v9 = vpop.f32.mrb[12].mxu0  ;;  %v3512_v11 = vpop.f32.mrb[20].mxu1 }
 0x851   : > { %v3470_v12 = vadd.f32 %v3469_v9, %v3098_v5  ;;  %v3513_v13 = vadd.f32 %v3512_v11, %v3106_v6  ;;  %v3471_v14 = vpop.f32.mrb[13].mxu0  ;;  %v3514_v15 = vpop.f32.mrb[21].mxu1  ;;  %v5235_v9 = vld [vmem:[%s6770_s6 + $0x1f0] ss:$8 sps:$4 sm:$0xff]   ;;  %v3597_v11 = vld [vmem:[%s776_s23] sm:$0x3] }
 0x852   : > { %v3472_v16 = vadd.f32 %v3471_v14, %v3102_v7  ;;  %v3515_v17 = vadd.f32 %v3514_v15, %v3110_v8  ;;  %v3473_v18 = vpop.f32.mrb[14].mxu0  ;;  %v3516_v19 = vpop.f32.mrb[22].mxu1  ;;  %s6775_s23 = sld [smem:[#allocation21_spill]] }
 0x853   : > { %v3474_v20 = vadd.f32 %v3473_v18, %v3098_v5  ;;  %v3517_v21 = vadd.f32 %v3516_v19, %v3106_v6  ;;  %v3475_v55 = vpop.f32.mrb[15].mxu0  ;;  %v3518_v3 = vpop.f32.mrb[23].mxu1  ;;  %v3521_v45 = vmax.f32 %v3470_v12, 0.0  ;;  %v3523_v4 = vmax.f32 %v3513_v13, 0.0  ;;  %v5229_v5 = vld [vmem:[%s6770_s6 + $0x1d0] ss:$8 sps:$4 sm:$0xff]  }
 0x854   : > { %v3476_v22 = vadd.f32 %v3475_v55, %v3102_v7  ;;  %v3519_v23 = vadd.f32 %v3518_v3, %v3110_v8  ;;  %v3522_v0 = vmax.f32 %v3472_v16, 0.0  ;;  %v3524_v30 = vmax.f32 %v3515_v17, 0.0  ;;  %v5234_v6 = vld [vmem:[%s6770_s6 + $0x1e4] ss:$8 sps:$4 sm:$0xff]   ;;  %v5232_v7 = vld [vmem:[%s6770_s6 + $0x1e0] ss:$8 sps:$4 sm:$0xff]  }
 0x855   : > { %v3525_v24 = vmax.f32 %v3474_v20, 0.0  ;;  %v3527_v28 = vmax.f32 %v3517_v21, 0.0  ;;  %v5237_v8 = vld [vmem:[%s6770_s6 + $0x1f4] ss:$8 sps:$4 sm:$0xff]   ;;  %v3602_v12 = vrot.slane %v3597_v11, %v6126_v48  ;;  %v3606_v13 = vrot.slane %v3597_v11, %v6132_v50  ;;  %s5390_s6 = sshll.u32 %s5532_s28, 4  ;;  %s5391_s6 = int_to_ptr.vmem [resolvable:$false] %s5390_s6 }
 0x856   : > { %v3526_v31 = vmax.f32 %v3476_v22, 0.0  ;;  %v3528_v29 = vmax.f32 %v3519_v23, 0.0  ;;  %s5392_s29 = scalar_lea.vmem %s5391_s6, 1024  ;;  %p5393_p10 = scmp.lt.s32.totalorder %s6590_s7, %s5391_s6 }
 0x857   : > { %v3529_v32 = vpack.c.bf16 %v3525_v24, %v3521_v45  ;;  %v6524_v33 = vpack.c.bf16 %v3527_v28, %v3523_v4  ;;  %p5394_p13 = scmp.lt.s32.totalorder %s5392_s29, %s5386_s22 }
 0x858   : > { %v3530_v34 = vpack.c.bf16 %v3526_v31, %v3522_v0  ;;  %v3532_v35 = vpack.c.bf16 %v3528_v29, %v3524_v30 }
 0x859   : > { %p5395_p11 = por %p5394_p13, %p5393_p10 }
 0x85a   : > { %3961 = vmatprep.mubr.bf16.mxu0 %v3530_v34 }
 0x85b   : > { %3962 = vmatmul.mubr.bf16.vlgmr.msra.gmra.mrb[16].mxu0 %v3529_v32 }
 0x85c   : > { %3973 = vmatpush1.bf16.msra.mxu0 %v5190_v49  ;;  %4004 = vmatprep.mubr.bf16.mxu0 %v3532_v35 }
 0x85d   : > { %3974 = vmatprep.subr.bf16.mxu0 %v5195_v36 }
 0x860   : > { %3975 = vmatpush1.bf16.msra.mxu0 %v5193_v37 }
 0x861   : > { %3976 = vmatprep.subr.bf16.mxu0 %v5198_v38 }
 0x864   : > { %3977 = vmatpush1.bf16.msra.mxu0 %v5196_v1 }
 0x865   : > { %3978 = vmatprep.subr.bf16.mxu0 %v5201_v10 }
 0x868   : > { %3979 = vmatpush1.bf16.msra.mxu0 %v5199_v39  ;;  %v4019_v39 = vld [vmem:[%s780_s10] sm:$0x3]  ;;  %s4680_s10 = sshll.u32 %s6775_s23, 9 }
 0x869   : > { %3980 = vmatprep.subr.bf16.mxu0 %v5204_v40  ;;  %v4020_v40 = vld [vmem:[%s784_s27] sm:$0x3]  ;;  %s6778_s27 = sld [smem:[#allocation28_spill]]  ;;  %s6588_s21 = scalar_lea.hbm %s6779_s16, %s4680_s10 }
 0x86c   : > { %3981 = vmatpush1.bf16.msra.mxu0 %v5202_v41  ;;  %v4057_v41 = vrot.slane %v4019_v39, %v6126_v48 }
 0x86d   : > { %3982 = vmatprep.subr.bf16.mxu0 %v5207_v42  ;;  %v4061_v42 = vrot.slane %v4019_v39, %v6132_v50 }
 0x86f   : > { %p6781_p7 = scmp.ne.s32.totalorder %s6778_s27, 0 }
 0x870   : > { %3983 = vmatpush1.bf16.msra.mxu0 %v5205_v44 }
 0x871   : > { %3984 = vmatprep.subr.bf16.mxu0 %v5210_v46  ;;  %v4072_v46 = vrot.slane %v4020_v40, %v6126_v48  ;;  %p5388_p3 = pnand %p5387_p2, %p6781_p7 }
 0x873   : > { %p5389_p0 = pneg %p5388_p3 }
 0x874   : > { %3985 = vmatpush1.bf16.msra.mxu0 %v5208_v47  ;;  %v4076_v47 = vrot.slane %v4020_v40, %v6132_v50 }
 0x875   : > { %3986 = vmatprep.subr.bf16.mxu0 %v5213_v43  ;;  %p5396_p4 = pnand %p5395_p11, %p5389_p0 }
 0x878   : > { %3987 = vmatpush1.bf16.msra.mxu0 %v5211_v51 }
 0x879   : > { %3988 = vmatprep.subr.bf16.mxu0 %v5216_v52 }
 0x87c   : > { %3989 = vmatpush1.bf16.msra.mxu0 %v5214_v53 }
 0x87d   : > { %3990 = vmatprep.subr.bf16.mxu0 %v5219_v54 }
 0x880   : > { %3991 = vmatpush1.bf16.msra.mxu0 %v5217_v56 }
 0x881   : > { %3992 = vmatprep.subr.bf16.mxu0 %v5222_v57 }
 0x884   : > { %3993 = vmatpush1.bf16.msra.mxu0 %v5220_v58 }
 0x885   : > { %3994 = vmatprep.subr.bf16.mxu0 %v5225_v59 }
 0x888   : > { %3995 = vmatpush1.bf16.msra.mxu0 %v5223_v60 }
 0x889   : > { %3996 = vmatprep.subr.bf16.mxu0 %v5228_v61 }
 0x88c   : > { %3997 = vmatpush1.bf16.msra.mxu0 %v5226_v62 }
 0x88d   : > { %3998 = vmatprep.subr.bf16.mxu0 %v5231_v63 }
 0x890   : > { %3999 = vmatpush1.bf16.msra.mxu0 %v5229_v5 }
 0x891   : > { %4000 = vmatprep.subr.bf16.mxu0 %v5234_v6 }
 0x894   : > { %4001 = vmatpush1.bf16.msra.mxu0 %v5232_v7 }
 0x895   : > { %4002 = vmatprep.subr.bf16.mxu0 %v5237_v8 }
 0x898   : > { %4003 = vmatpush1.bf16.msra.mxu0 %v5235_v9 }
 0x89b   : > { %4005 = vmatmul.mubr.bf16.vlgmr.msra.gmra.mrb[16].mxu0 %v6524_v33 }
 0x96e   : > { %v4006_v14 = vpop.f32.mrb[16].mxu0 }
 0x96f   : > { %v4713_v15 = vadd.f32 %v4006_v14, %v3602_v12  ;;  %v4008_v16 = vpop.f32.mrb[17].mxu0 }
 0x970   : > { %v4714_v17 = vadd.f32 %v4008_v16, %v3606_v13  ;;  %v4010_v18 = vpop.f32.mrb[18].mxu0 }
 0x971   : > { %v4015_v19 = vadd.f32 %v4713_v15, %v6477_v26  ;;  %v4715_v20 = vadd.f32 %v4010_v18, %v3602_v12  ;;  %v4012_v21 = vpop.f32.mrb[19].mxu0 }
 0x972   : > { %v4016_v55 = vadd.f32 %v4714_v17, %v6473_v2  ;;  %v4716_v3 = vadd.f32 %v4012_v21, %v3606_v13 }
 0x973   : > { %v4017_v22 = vadd.f32 %v4715_v20, %v6479_v27 }
 0x974   : > { %v4018_v23 = vadd.f32 %v4716_v3, %v6475_v25  ;;  %v4021_v45 = vadd.f32 %v4016_v55, %v4015_v19 }
 0x976   : > { %4022 = vadd.xlane.f32.xlu0 %v4021_v45  ;;  %v4024_v4 = vadd.f32 %v4018_v23, %v4017_v22 }
 0x978   : > { %4025 = vadd.xlane.f32.xlu1 %v4024_v4 }
 0xa03   : > { %v4023_v24 = vpop.xlane.xlu0 %4022 }
 0xa04   : > { %v4027_v28 = vmul.f32 0.00390625, %v4023_v24 }
 0xa05   : > { %v4026_v0 = vpop.xlane.xlu1 %4025 }
 0xa06   : > { %v4029_v30 = vsub.f32 %v4015_v19, %v4027_v28  ;;  %v4030_v31 = vsub.f32 %v4016_v55, %v4027_v28  ;;  %v4028_v29 = vmul.f32 0.00390625, %v4026_v0 }
 0xa08   : > { %v4031_v26 = vsub.f32 %v4017_v22, %v4028_v29  ;;  %v4032_v32 = vsub.f32 %v4018_v23, %v4028_v29  ;;  %v4033_v33 = vmul.f32 %v4029_v30, %v4029_v30  ;;  %v4034_v2 = vmul.f32 %v4030_v31, %v4030_v31 }
 0xa0a   : > { %v4037_v34 = vadd.f32 %v4034_v2, %v4033_v33  ;;  %v4035_v27 = vmul.f32 %v4031_v26, %v4031_v26  ;;  %v4036_v35 = vmul.f32 %v4032_v32, %v4032_v32 }
 0xa0c   : > { %4038 = vadd.xlane.f32.xlu0 %v4037_v34  ;;  %v4040_v25 = vadd.f32 %v4036_v35, %v4035_v27 }
 0xa0e   : > { %4041 = vadd.xlane.f32.xlu1 %v4040_v25 }
 0xa99   : > { %v4039_v49 = vpop.xlane.xlu0 %4038 }
 0xa9a   : > { %v4043_v36 = vmul.f32 0.00390625, %v4039_v49 }
 0xa9b   : > { %v4042_v37 = vpop.xlane.xlu1 %4041 }
 0xa9c   : > { %v4045_v38 = vadd.f32 1e-05, %v4043_v36  ;;  %v4044_v1 = vmul.f32 0.00390625, %v4042_v37 }
 0xa9e   : > { %5258 = vrsqrt.f32 %v4045_v38  ;;  %v4046_v10 = vadd.f32 1e-05, %v4044_v1 }
 0xaa0   : > { %5260 = vrsqrt.f32 %v4046_v10 }
 0xaa8   : > { %v5259_v44 = vpop.eup %5258 }
 0xaa9   : > { %v4049_v43 = vmul.f32 %v5259_v44, %v4029_v30  ;;  %v4050_v51 = vmul.f32 %v5259_v44, %v4030_v31 }
 0xaaa   : > { %v5261_v52 = vpop.eup %5260 }
 0xaab   : > { %v4064_v53 = vmul.f32 %v4057_v41, %v4049_v43  ;;  %v4065_v54 = vmul.f32 %v4061_v42, %v4050_v51  ;;  %v4051_v56 = vmul.f32 %v5261_v52, %v4031_v26  ;;  %v4052_v57 = vmul.f32 %v5261_v52, %v4032_v32 }
 0xaad   : > { %v4079_v58 = vadd.f32 %v4072_v46, %v4064_v53  ;;  %v4080_v59 = vadd.f32 %v4076_v47, %v4065_v54  ;;  %v4066_v48 = vmul.f32 %v4057_v41, %v4051_v56  ;;  %v4067_v60 = vmul.f32 %v4061_v42, %v4052_v57 }
 0xaaf   : > { %4083 = vst [vmem:[%s6001_s17] sm:$0xff] %v4079_v58  ;;  %4084 = vst [vmem:[%s6001_s17 + $0x8] sm:$0xff] %v4080_v59  ;;  %v4081_v50 = vadd.f32 %v4072_v46, %v4066_v48  ;;  %v4082_v61 = vadd.f32 %v4076_v47, %v4067_v60 }
 0xab1   : > { %4085 = vst [vmem:[%s6001_s17 + $0x10] sm:$0xff] %v4081_v50  ;;  %4086 = vst [vmem:[%s6001_s17 + $0x18] sm:$0xff] %v4082_v61 }
 0xab2   : > { %5399 = shalt.err (!%p5396_p4)
}
 0xab3   : > { %s5400_s17 = scalar_lea.hbm %s6588_s21, 512  ;;  %s5404_s25 = scalar_lea.hbm %s6780_s11, 1024 }
 0xab4   : > { %p5401_p9 = scmp.ne.s32.totalorder %s6588_s21, %s5400_s17  ;;  %p5405_p1 = scmp.lt.u32.totalorder %s6588_s21, %s6780_s11 }
 0xab5   : > { %p5406_p8 = scmp.lt.u32.totalorder %s5404_s25, %s5400_s17  ;;  %p5408_p2 = scmp.lt.u32.totalorder %s5400_s17, %s6588_s21 }
 0xab6   : > { %p5402_p5 = pnand %p5401_p9, %p6781_p7 }
 0xab7   : > { %p5407_p6 = por %p5406_p8, %p5405_p1 }
 0xab8   : > { %p5403_p12 = pneg %p5402_p5 }
 0xab9   : > { %p5409_p3 = por %p5408_p2, %p5407_p6 }
 0xabb   : > { %p5410_p0 = pnand %p5409_p3, %p5403_p12 }
 0xabd   : > { %5413 = shalt.err (!%p5410_p0)
}
 0xabe   : > { %s5533_s13 = smov 256   ;;  %s5534_s2 = smov 16  }
 0xabf   : > { %4733 = dma.vmem_to_hbm [thread:$0]  (%p6781_p7), %s6590_s7, 512, %s6588_s21, %s4088_s1, %s5533_s13, %s5533_s13, %s5534_s2  }
 0xac0 PF: > { %s6782_s3 = sld [smem:[#allocation24_spill]]  ;;  %s6783_s15 = sld [smem:[#allocation17_spill]] }
 0xac1   : > { %s6784_s23 = sld [smem:[#allocation30_spill]] }
 0xac6   : > { %p4753_p10 = scmp.ge.s32.totalorder %s6782_s3, 2  ;;  %s4116_s19 = sand.u32 1, %s6783_s15  }
 0xac7   : > { %p6785_p13 = scmp.ne.s32.totalorder %s6784_s23, 0  ;;  %s4117_s0 = scalar_lea.sflag [#allocation4], %s4116_s19 }
 0xac9   : > { %p4749_p11 = pnand %p4753_p10, %p6785_p13 }
 0xacb   : > { %5471 = dma.done.wait (!%p4749_p11), %s4117_s0, 512  }
 0xacc   : > { %5473 = vsyncadd (!%p4749_p11), %s4117_s0, 4294966784  ;;  %s36_s23 = sadd.s32 1, %s6782_s3   ;;  %s6786_s29 = sld [smem:[#allocation15_spill]] }
 0xacd   : > { %p33_p4 = scmp.ge.s32.totalorder %s36_s23, 6   ;;  %s6787_s30 = sld [smem:[#allocation16_spill]] }
 0xace   : > { %s6788_s15 = sld [smem:[#allocation26_spill]]  ;;  %s6789_s16 = sld [smem:[#allocation18_spill]] }
 0xacf   : > { %s6790_s17 = sld [smem:[#allocation19_spill]]  ;;  %s6791_s18 = sld [smem:[#allocation29_spill]] }
 0xad0   : > { %s6792_s19 = sld [smem:[#allocation22_spill]]  ;;  %s6793_s20 = sld [smem:[#allocation23_spill]] }
 0xad1   : > { %s6794_s21 = sld [smem:[#allocation25_spill]]  ;;  %s6795_s22 = sld [smem:[#allocation27_spill]] }
 0xad2   :  { %35 = sbr.rel (!%p33_p4) target bundleno = 29 (0x1d), region = 192 }
 0xad9   :  { %4122 = vsyncpa [#allocation3], 1 }
 0xada   :  { %4124 = vsyncpa [#allocation3 + $0x1], 1 }
 0xadb   :  { %4125 = vsyncpa [#allocation6], 1 }
 0xadc   :  { %4127 = vsyncpa [#allocation6 + $0x1], 1 }
 0xadd   :  { %4128 = vsyncpa [#allocation9], 1 }
 0xade   :  { %4130 = vsyncpa [#allocation9 + $0x1], 1 }
 0xadf   :  { %4131 = vsyncpa [#allocation4], 1 }
 0xae0   :  { %4133 = vsyncpa [#allocation4 + $0x1], 1 }

</bundles_post_ra>
